<compile_context>
chip_gen: v7x
topology: tpu7x:2x2x1
jax: 0.10.0
libtpu: 0.0.40
codegen_flags: <defaults>
</compile_context>

<pallas_src>
import functools

import jax
import jax.numpy as jnp
from jax import lax
from jax.experimental import pallas as pl
from jax.experimental.pallas import tpu as pltpu


def _mlp_kernel(x_ref, w1_ref, b1_ref, w2_ref, b2_ref,
                w3_ref, b3_ref, w4_ref, b4_ref, o_ref):
    # x_ref: (tile, D) bf16; w1/w2/w3: (in, out) bf16; w4: (1, 64) f32 row;
    # biases: f32; o_ref: (1, tile) f32 (lane-dense logits for this tile).
    x = x_ref[...]

    h1 = jnp.dot(x, w1_ref[...], preferred_element_type=jnp.float32) + b1_ref[...]
    h1 = jnp.maximum(h1, 0.0).astype(jnp.bfloat16)

    h2 = jnp.dot(h1, w2_ref[...], preferred_element_type=jnp.float32) + b2_ref[...]
    h2 = jnp.maximum(h2, 0.0).astype(jnp.bfloat16)

    h3 = jnp.dot(h2, w3_ref[...], preferred_element_type=jnp.float32) + b3_ref[...]
    h3 = jnp.maximum(h3, 0.0)  # keep f32 for the small final layer

    # Final layer: (1, 64) @ (tile, 64)^T -> (1, tile), already lane-dense.
    z = lax.dot_general(
        w4_ref[...], h3,
        dimension_numbers=(((1,), (1,)), ((), ())),
        preferred_element_type=jnp.float32) + b4_ref[...]

    o_ref[...] = pl.reciprocal(1.0 + jnp.exp(-z), approx=True).astype(o_ref.dtype)


@functools.partial(jax.jit, static_argnames=("batch_tile",))
def mlp_forward(x, params, batch_tile=128):
    """x: (B, D_in) float32. params: (in,out) weights, (1,out) biases (f32)."""
    B, D = x.shape
    nt = pl.cdiv(B, batch_tile)
    Bp = nt * batch_tile
    xp = x if Bp == B else jnp.pad(x, ((0, Bp - B), (0, 0)))
    xp = xp.astype(jnp.bfloat16)

    w1 = params["w1"].astype(jnp.bfloat16)
    w2 = params["w2"].astype(jnp.bfloat16)
    w3 = params["w3"].astype(jnp.bfloat16)
    b1, b2, b3 = params["b1"], params["b2"], params["b3"]
    w4 = params["w4"].reshape(1, -1).astype(jnp.float32)   # (1, 64) row
    b4 = params["b4"].reshape(1, 1).astype(jnp.float32)    # (1, 1)

    def resident(arr):
        # Whole (small) array lives in VMEM; same block every grid step, so it
        # is DMA'd once and reused.
        return pl.BlockSpec(arr.shape, lambda i: (0, 0))

    out = pl.pallas_call(
        _mlp_kernel,
        out_shape=jax.ShapeDtypeStruct((nt, batch_tile), jnp.float32),
        grid_spec=pltpu.PrefetchScalarGridSpec(
            num_scalar_prefetch=0,
            grid=(nt,),
            in_specs=[
                pl.BlockSpec((batch_tile, D), lambda i: (i, 0)),   # x tile
                resident(w1), resident(b1),
                resident(w2), resident(b2),
                resident(w3), resident(b3),
                resident(w4), resident(b4),
            ],
            out_specs=pl.BlockSpec((1, batch_tile), lambda i: (i, 0)),
        ),
        compiler_params=pltpu.CompilerParams(
            dimension_semantics=("parallel",),
            vmem_limit_bytes=48 * 1024 * 1024,   # safe on v5e/v6e/v7x
        ),
    )(xp, w1, b1, w2, b2, w3, b3, w4, b4)

    # (nt, tile) lane-dense logits -> (B, 1)
    return out.reshape(-1)[:B].reshape(B, 1)


def xavier_uniform(key, fan_in, fan_out, dtype=jnp.float32):
    # Matches torch.nn.init.xavier_uniform_ bounds (gain=1).
    limit = (6.0 / (fan_in + fan_out)) ** 0.5
    return jax.random.uniform(key, (fan_in, fan_out), dtype,
                              minval=-limit, maxval=limit)


def init_params(key, input_shape):
    dims = [input_shape, 1024, 256, 64, 1]
    keys = jax.random.split(key, 4)
    params = {}
    for idx, (k, (din, dout)) in enumerate(zip(keys, zip(dims[:-1], dims[1:])), 1):
        params[f"w{idx}"] = xavier_uniform(k, din, dout)
        params[f"b{idx}"] = jnp.zeros((1, dout), jnp.float32)
    return params


if __name__ == "__main__":
    key = jax.random.PRNGKey(0)
    k_param, k_x = jax.random.split(key)

    input_shape = 32   # feature dim of Linear(input_shape, 1024)
    batch = 8

    params = init_params(k_param, input_shape)
    x = jax.random.normal(k_x, (batch, input_shape), jnp.float32)

    y = mlp_forward(x, params)          # default batch_tile=128 (batch padded)
    jax.block_until_ready(y)

    # Plain-JAX reference with the same bf16 operand casts / f32 accumulation.
    h1 = jnp.maximum(jnp.dot(x.astype(jnp.bfloat16), params["w1"].astype(jnp.bfloat16),
                             preferred_element_type=jnp.float32) + params["b1"], 0.0)
    h2 = jnp.maximum(jnp.dot(h1.astype(jnp.bfloat16), params["w2"].astype(jnp.bfloat16),
                             preferred_element_type=jnp.float32) + params["b2"], 0.0)
    h3 = jnp.maximum(jnp.dot(h2.astype(jnp.bfloat16), params["w3"].astype(jnp.bfloat16),
                             preferred_element_type=jnp.float32) + params["b3"], 0.0)
    z = jnp.dot(h3, params["w4"], preferred_element_type=jnp.float32) + params["b4"]
    ref = jax.nn.sigmoid(z)

    assert y.shape == (batch, 1)
    assert jnp.allclose(y, ref, atol=2e-3), "mismatch vs reference"

    print("KERNEL_OK")
</pallas_src>

<mosaic_0001>
module attributes {stable_mosaic.version = 11 : i64} {
  func.func @_mlp_kernel(%arg0: i32, %arg1: memref<128x32xbf16, #tpu.memory_space<vmem>>, %arg2: memref<32x1024xbf16, #tpu.memory_space<vmem>>, %arg3: memref<1x1024xf32, #tpu.memory_space<vmem>>, %arg4: memref<1024x256xbf16, #tpu.memory_space<vmem>>, %arg5: memref<1x256xf32, #tpu.memory_space<vmem>>, %arg6: memref<256x64xbf16, #tpu.memory_space<vmem>>, %arg7: memref<1x64xf32, #tpu.memory_space<vmem>>, %arg8: memref<1x64xf32, #tpu.memory_space<vmem>>, %arg9: memref<1x1xf32, #tpu.memory_space<vmem>>, %arg10: memref<1x128xf32, #tpu.memory_space<vmem>>) attributes {dimension_semantics = [#tpu.dimension_semantics<parallel>], iteration_bounds = array<i64: 1>, scalar_prefetch = 0 : i64, scratch_operands = 0 : i64, tpu.core_type = #tpu.core_type<tc>, window_params = [{transform_indices = @transform_0, window_bounds = array<i64: 128, 32>}, {pipeline_mode = #tpu.pipeline_mode<synchronous>, transform_indices = @transform_1, window_bounds = array<i64: 32, 1024>}, {pipeline_mode = #tpu.pipeline_mode<synchronous>, transform_indices = @transform_2, window_bounds = array<i64: 1, 1024>}, {pipeline_mode = #tpu.pipeline_mode<synchronous>, transform_indices = @transform_3, window_bounds = array<i64: 1024, 256>}, {pipeline_mode = #tpu.pipeline_mode<synchronous>, transform_indices = @transform_4, window_bounds = array<i64: 1, 256>}, {pipeline_mode = #tpu.pipeline_mode<synchronous>, transform_indices = @transform_5, window_bounds = array<i64: 256, 64>}, {pipeline_mode = #tpu.pipeline_mode<synchronous>, transform_indices = @transform_6, window_bounds = array<i64: 1, 64>}, {pipeline_mode = #tpu.pipeline_mode<synchronous>, transform_indices = @transform_7, window_bounds = array<i64: 1, 64>}, {pipeline_mode = #tpu.pipeline_mode<synchronous>, transform_indices = @transform_8, window_bounds = array<i64: 1, 1>}, {transform_indices = @transform_9, window_bounds = array<i64: 1, 128>}]} {
    %c0 = arith.constant 0 : index
    %c0_0 = arith.constant 0 : index
    %0 = vector.load %arg1[%c0, %c0_0] : memref<128x32xbf16, #tpu.memory_space<vmem>>, vector<128x32xbf16>
    %c0_1 = arith.constant 0 : index
    %c0_2 = arith.constant 0 : index
    %1 = vector.load %arg2[%c0_1, %c0_2] : memref<32x1024xbf16, #tpu.memory_space<vmem>>, vector<32x1024xbf16>
    %cst = arith.constant dense<0.000000e+00> : vector<128x1024xf32>
    %2 = tpu.matmul %0, %1, %cst {dimension_numbers = #tpu.dot_dimension_numbers<[1], [0], [0], [1], [0, 0, 1, 1], [], []>} : vector<128x32xbf16>, vector<32x1024xbf16>, vector<128x1024xf32> -> vector<128x1024xf32>
    %c0_3 = arith.constant 0 : index
    %c0_4 = arith.constant 0 : index
    %3 = vector.load %arg3[%c0_3, %c0_4] : memref<1x1024xf32, #tpu.memory_space<vmem>>, vector<1x1024xf32>
    %4 = vector.broadcast %3 : vector<1x1024xf32> to vector<128x1024xf32>
    %5 = arith.addf %2, %4 : vector<128x1024xf32>
    %cst_5 = arith.constant 0.000000e+00 : f32
    %6 = vector.broadcast %cst_5 : f32 to vector<128x1024xf32>
    %7 = arith.maximumf %5, %6 : vector<128x1024xf32>
    %8 = arith.truncf %7 : vector<128x1024xf32> to vector<128x1024xbf16>
    %c0_6 = arith.constant 0 : index
    %c0_7 = arith.constant 0 : index
    %9 = vector.load %arg4[%c0_6, %c0_7] : memref<1024x256xbf16, #tpu.memory_space<vmem>>, vector<1024x256xbf16>
    %cst_8 = arith.constant dense<0.000000e+00> : vector<128x256xf32>
    %10 = tpu.matmul %8, %9, %cst_8 {dimension_numbers = #tpu.dot_dimension_numbers<[1], [0], [0], [1], [0, 0, 1, 1], [], []>} : vector<128x1024xbf16>, vector<1024x256xbf16>, vector<128x256xf32> -> vector<128x256xf32>
    %c0_9 = arith.constant 0 : index
    %c0_10 = arith.constant 0 : index
    %11 = vector.load %arg5[%c0_9, %c0_10] : memref<1x256xf32, #tpu.memory_space<vmem>>, vector<1x256xf32>
    %12 = vector.broadcast %11 : vector<1x256xf32> to vector<128x256xf32>
    %13 = arith.addf %10, %12 : vector<128x256xf32>
    %cst_11 = arith.constant 0.000000e+00 : f32
    %14 = vector.broadcast %cst_11 : f32 to vector<128x256xf32>
    %15 = arith.maximumf %13, %14 : vector<128x256xf32>
    %16 = arith.truncf %15 : vector<128x256xf32> to vector<128x256xbf16>
    %c0_12 = arith.constant 0 : index
    %c0_13 = arith.constant 0 : index
    %17 = vector.load %arg6[%c0_12, %c0_13] : memref<256x64xbf16, #tpu.memory_space<vmem>>, vector<256x64xbf16>
    %cst_14 = arith.constant dense<0.000000e+00> : vector<128x64xf32>
    %18 = tpu.matmul %16, %17, %cst_14 {dimension_numbers = #tpu.dot_dimension_numbers<[1], [0], [0], [1], [0, 0, 1, 1], [], []>} : vector<128x256xbf16>, vector<256x64xbf16>, vector<128x64xf32> -> vector<128x64xf32>
    %c0_15 = arith.constant 0 : index
    %c0_16 = arith.constant 0 : index
    %19 = vector.load %arg7[%c0_15, %c0_16] : memref<1x64xf32, #tpu.memory_space<vmem>>, vector<1x64xf32>
    %20 = vector.broadcast %19 : vector<1x64xf32> to vector<128x64xf32>
    %21 = arith.addf %18, %20 : vector<128x64xf32>
    %cst_17 = arith.constant 0.000000e+00 : f32
    %22 = vector.broadcast %cst_17 : f32 to vector<128x64xf32>
    %23 = arith.maximumf %21, %22 : vector<128x64xf32>
    %c0_18 = arith.constant 0 : index
    %c0_19 = arith.constant 0 : index
    %24 = vector.load %arg8[%c0_18, %c0_19] : memref<1x64xf32, #tpu.memory_space<vmem>>, vector<1x64xf32>
    %cst_20 = arith.constant dense<0.000000e+00> : vector<1x128xf32>
    %25 = tpu.matmul %24, %23, %cst_20 {dimension_numbers = #tpu.dot_dimension_numbers<[1], [1], [0], [0], [0, 0, 1, 0], [], []>} : vector<1x64xf32>, vector<128x64xf32>, vector<1x128xf32> -> vector<1x128xf32>
    %c0_21 = arith.constant 0 : index
    %c0_22 = arith.constant 0 : index
    %26 = vector.load %arg9[%c0_21, %c0_22] : memref<1x1xf32, #tpu.memory_space<vmem>>, vector<1x1xf32>
    %27 = vector.broadcast %26 : vector<1x1xf32> to vector<1x128xf32>
    %28 = arith.addf %25, %27 : vector<1x128xf32>
    %cst_23 = arith.constant 0.000000e+00 : f32
    %29 = vector.broadcast %cst_23 : f32 to vector<1x128xf32>
    %30 = arith.subf %29, %28 : vector<1x128xf32>
    %31 = math.exp %30 : vector<1x128xf32>
    %cst_24 = arith.constant 1.000000e+00 : f32
    %32 = vector.broadcast %cst_24 : f32 to vector<1x128xf32>
    %33 = arith.addf %32, %31 : vector<1x128xf32>
    %34 = tpu.reciprocal %33 {approx = true} : vector<1x128xf32> -> vector<1x128xf32>
    %c0_25 = arith.constant 0 : index
    %c0_26 = arith.constant 0 : index
    %35 = vector.load %arg10[%c0_25, %c0_26] : memref<1x128xf32, #tpu.memory_space<vmem>>, vector<1x128xf32>
    tpu.vector_store %arg10[%c0_25, %c0_26], %34 {strides = array<i32>} : memref<1x128xf32, #tpu.memory_space<vmem>>, vector<1x128xf32>,
    return
  }
  func.func @transform_0(%arg0: i32) -> (i32, i32) {
    %c0_i32 = arith.constant 0 : i32
    %c0_i32_0 = arith.constant 0 : i32
    return %arg0, %c0_i32 : i32, i32
  }
  func.func @transform_1(%arg0: i32) -> (i32, i32) {
    %c0_i32 = arith.constant 0 : i32
    %c0_i32_0 = arith.constant 0 : i32
    %c0_i32_1 = arith.constant 0 : i32
    return %c0_i32, %c0_i32_0 : i32, i32
  }
  func.func @transform_2(%arg0: i32) -> (i32, i32) {
    %c0_i32 = arith.constant 0 : i32
    %c0_i32_0 = arith.constant 0 : i32
    %c0_i32_1 = arith.constant 0 : i32
    return %c0_i32, %c0_i32_0 : i32, i32
  }
  func.func @transform_3(%arg0: i32) -> (i32, i32) {
    %c0_i32 = arith.constant 0 : i32
    %c0_i32_0 = arith.constant 0 : i32
    %c0_i32_1 = arith.constant 0 : i32
    return %c0_i32, %c0_i32_0 : i32, i32
  }
  func.func @transform_4(%arg0: i32) -> (i32, i32) {
    %c0_i32 = arith.constant 0 : i32
    %c0_i32_0 = arith.constant 0 : i32
    %c0_i32_1 = arith.constant 0 : i32
    return %c0_i32, %c0_i32_0 : i32, i32
  }
  func.func @transform_5(%arg0: i32) -> (i32, i32) {
    %c0_i32 = arith.constant 0 : i32
    %c0_i32_0 = arith.constant 0 : i32
    %c0_i32_1 = arith.constant 0 : i32
    return %c0_i32, %c0_i32_0 : i32, i32
  }
  func.func @transform_6(%arg0: i32) -> (i32, i32) {
    %c0_i32 = arith.constant 0 : i32
    %c0_i32_0 = arith.constant 0 : i32
    %c0_i32_1 = arith.constant 0 : i32
    return %c0_i32, %c0_i32_0 : i32, i32
  }
  func.func @transform_7(%arg0: i32) -> (i32, i32) {
    %c0_i32 = arith.constant 0 : i32
    %c0_i32_0 = arith.constant 0 : i32
    %c0_i32_1 = arith.constant 0 : i32
    return %c0_i32, %c0_i32_0 : i32, i32
  }
  func.func @transform_8(%arg0: i32) -> (i32, i32) {
    %c0_i32 = arith.constant 0 : i32
    %c0_i32_0 = arith.constant 0 : i32
    %c0_i32_1 = arith.constant 0 : i32
    return %c0_i32, %c0_i32_0 : i32, i32
  }
  func.func @transform_9(%arg0: i32) -> (i32, i32) {
    %c0_i32 = arith.constant 0 : i32
    %c0_i32_0 = arith.constant 0 : i32
    return %arg0, %c0_i32 : i32, i32
  }
}

</mosaic_0001>

<bundles_post_ra>
// kernel: mlp_forward.1
= control target key start
LH: loop header
LB: loop body
LE: loop exit
PB: predicated region body
PF: predicated region fallthrough
CT: control target
= control target key end

     0   :  { %v3356_v3 = vmov 0   ;;  %vm229_vm0 = vcmask 261120   ;;  %vm3358_vm1 = vmmov 0   ;;  %vm2437_vm2 = vcmask 523264   ;;  %s4601_s1 = inlined_call_operand.vmem [shape: bf16[32,1024], index: 1, kind: input, shape index: {}]   ;;  %s4602_s0 = inlined_call_operand.vmem [shape: bf16[128,32], index: 0, kind: input, shape index: {}]   ;;  %s4603_s3 = inlined_call_operand.vmem [shape: bf16[1024,256], index: 3, kind: input, shape index: {}]   ;;  %s4604_s2 = inlined_call_operand.vmem [shape: f32[1,1024], index: 2, kind: input, shape index: {}]   ;;  %s4605_s5 = inlined_call_operand.vmem [shape: bf16[256,64], index: 5, kind: input, shape index: {}]   ;;  %s4606_s4 = inlined_call_operand.vmem [shape: f32[1,256], index: 4, kind: input, shape index: {}]   ;;  %s4607_s8 = inlined_call_operand.<no memory space> [shape: f32[1,1], index: 8, kind: input, shape index: {}]   ;;  %s4608_s6 = inlined_call_operand.vmem [shape: f32[1,64], index: 6, kind: input, shape index: {}]   ;;  %s4609_s7 = inlined_call_operand.vmem [shape: f32[1,64], index: 7, kind: input, shape index: {}]   ;;  %s4610_s9 = inlined_call_operand.vmem [shape: f32[1,128], index: 9, kind: output, shape index: {}]  }
   0x1   :  { %v51_v0 = vld [vmem:[%s4601_s1] sm:$0xff]  ;;  %286 = vmatprep.mubr.bf16.mxu0 %v3356_v3  ;;  %316 = vmatprep.mubr.bf16.mxu1 %v3356_v3  ;;  %v52_v9 = vld [vmem:[%s4601_s1 + $0x8] sm:$0xff]  ;;  %v3439_v13 = vld [vmem:[%s4602_s0 + $0x18] sm:$0xff]  }
   0x2   :  { %v55_v1 = vld [vmem:[%s4601_s1 + $0x20] sm:$0xff]  ;;  %3103 = vset.pattern.permute.xlu0 %v3356_v3  ;;  %v56_v10 = vld [vmem:[%s4601_s1 + $0x28] sm:$0xff]  ;;  %v53_v18 = vld [vmem:[%s4601_s1 + $0x10] sm:$0xff] }
   0x3   :  { %v59_v2 = vld [vmem:[%s4601_s1 + $0x40] sm:$0xff]  ;;  %v2578_v4 = vcombine.high %v51_v0, %v55_v1  ;;  %v2577_v5 = vcombine.low %v51_v0, %v55_v1  ;;  %v2580_v12 = vcombine.high %v52_v9, %v56_v10  ;;  %v2579_v14 = vcombine.low %v52_v9, %v56_v10  ;;  %v60_v15 = vld [vmem:[%s4601_s1 + $0x48] sm:$0xff]  ;;  %v57_v19 = vld [vmem:[%s4601_s1 + $0x30] sm:$0xff] }
   0x4   :  { %v63_v6 = vld [vmem:[%s4601_s1 + $0x60] sm:$0xff]  ;;  %v64_v16 = vld [vmem:[%s4601_s1 + $0x68] sm:$0xff]  ;;  %v61_v20 = vld [vmem:[%s4601_s1 + $0x50] sm:$0xff]  ;;  %v2581_v23 = vcombine.low %v53_v18, %v57_v19  ;;  %v2582_v24 = vcombine.high %v53_v18, %v57_v19 }
   0x5   :  { %v2586_v7 = vcombine.high %v59_v2, %v63_v6  ;;  %254 = vmatprep.subr.bf16.mxu0 %v2578_v4  ;;  %2935 = vmatprep.subr.bf16.mxu1 %v2578_v4  ;;  %v2585_v8 = vcombine.low %v59_v2, %v63_v6  ;;  %v3434_v11 = vld [vmem:[%s4602_s0] sm:$0xff]   ;;  %v2588_v17 = vcombine.high %v60_v15, %v64_v16  ;;  %v65_v21 = vld [vmem:[%s4601_s1 + $0x70] sm:$0xff]  ;;  %v3467_v25 = vld [vmem:[%s4601_s1 + $0x18] sm:$0xff] }
   0x6   :  { %255 = vmatpush1.bf16.msra.mxu0 %v2577_v5  ;;  %2937 = vmatpush1.bf16.msra.mxu1 %v2577_v5  ;;  %v2587_v22 = vcombine.low %v60_v15, %v64_v16  ;;  %v58_v26 = vld [vmem:[%s4601_s1 + $0x38] sm:$0xff]  ;;  %v2590_v27 = vcombine.high %v61_v20, %v65_v21  ;;  %v3477_v29 = vld [vmem:[%s4602_s0 + $0x8] sm:$0xff]   ;;  %v3482_v30 = vld [vmem:[%s4602_s0 + $0x20] sm:$0xff]   ;;  %v2589_v32 = vcombine.low %v61_v20, %v65_v21 }
   0x7   :  { %256 = vmatprep.subr.bf16.mxu0 %v2586_v7  ;;  %2936 = vmatprep.subr.bf16.mxu1 %v2586_v7  ;;  %v2584_v28 = vcombine.high %v3467_v25, %v58_v26  ;;  %v3114_v31 = vld [vmem:[%s4603_s3 + $0x4] ss:$8 sps:$4 sm:$0xff]   ;;  %v3496_v33 = vld [vmem:[%s4602_s0 + $0x10] sm:$0xff]   ;;  %v3112_v36 = vld [vmem:[%s4603_s3] ss:$8 sps:$4 sm:$0xff]   ;;  %v2583_v47 = vcombine.low %v3467_v25, %v58_v26  ;;  %v69_v26 = vlaneseq }
   0x8   :  { %v3501_v34 = vld [vmem:[%s4602_s0 + $0x28] sm:$0xff]   ;;  %v3512_v35 = vld [vmem:[%s4602_s0 + $0x30] sm:$0xff]   ;;  %v3535_v40 = vld [vmem:[%s4602_s0 + $0x38] sm:$0xff]  }
   0x9   :  { %v3117_v37 = vld [vmem:[%s4603_s3 + $0x14] ss:$8 sps:$4 sm:$0xff]   ;;  %v3115_v38 = vld [vmem:[%s4603_s3 + $0x10] ss:$8 sps:$4 sm:$0xff]   ;;  %v3120_v39 = vld [vmem:[%s4603_s3 + $0x24] ss:$8 sps:$4 sm:$0xff]  }
   0xa   :  { %257 = vmatpush1.bf16.msra.mxu0 %v2585_v8  ;;  %2938 = vmatpush1.bf16.msra.mxu1 %v2585_v8  ;;  %v3118_v41 = vld [vmem:[%s4603_s3 + $0x20] ss:$8 sps:$4 sm:$0xff]   ;;  %v3123_v42 = vld [vmem:[%s4603_s3 + $0x34] ss:$8 sps:$4 sm:$0xff]   ;;  %v3121_v43 = vld [vmem:[%s4603_s3 + $0x30] ss:$8 sps:$4 sm:$0xff]  }
   0xb   :  { %367 = vmatprep.subr.bf16.mxu1 %v2580_v12  ;;  %480 = vmatprep.subr.bf16.mxu0 %v2582_v24  ;;  %v62_v44 = vld [vmem:[%s4601_s1 + $0x58] sm:$0xff]  ;;  %v3126_v46 = vld [vmem:[%s4603_s3 + $0x44] ss:$8 sps:$4 sm:$0xff]   ;;  %v3124_v48 = vld [vmem:[%s4603_s3 + $0x40] ss:$8 sps:$4 sm:$0xff]  }
   0xc   :  { %v66_v45 = vld [vmem:[%s4601_s1 + $0x78] sm:$0xff]  ;;  %v3132_v53 = vld [vmem:[%s4603_s3 + $0x64] ss:$8 sps:$4 sm:$0xff]   ;;  %v3130_v54 = vld [vmem:[%s4603_s3 + $0x60] ss:$8 sps:$4 sm:$0xff]  }
   0xd   :  { %2593 = vmatmul.mubr.msk.bf16.vlgmr.msra.gmra.mrb[0].mxu0 %vm229_vm0, %v3434_v11  ;;  %2596 = vmatmul.mubr.msk.bf16.vlgmr.msra.gmra.mrb[0].mxu1 %vm229_vm0, %v3439_v13  ;;  %v2592_v49 = vcombine.high %v62_v44, %v66_v45  ;;  %v3129_v50 = vld [vmem:[%s4603_s3 + $0x54] ss:$8 sps:$4 sm:$0xff]   ;;  %v2591_v51 = vcombine.low %v62_v44, %v66_v45  ;;  %v3127_v52 = vld [vmem:[%s4603_s3 + $0x50] ss:$8 sps:$4 sm:$0xff]   ;;  %v3138_v57 = vld [vmem:[%s4603_s3 + $0x84] ss:$8 sps:$4 sm:$0xff]  }
   0xe   :  { %296 = vmatprep.mubr.bf16.mxu0 %v3356_v3  ;;  %368 = vmatpush1.bf16.msra.mxu1 %v2579_v14  ;;  %v3135_v55 = vld [vmem:[%s4603_s3 + $0x74] ss:$8 sps:$4 sm:$0xff]   ;;  %v3133_v56 = vld [vmem:[%s4603_s3 + $0x70] ss:$8 sps:$4 sm:$0xff]   ;;  %v3136_v58 = vld [vmem:[%s4603_s3 + $0x80] ss:$8 sps:$4 sm:$0xff]  }
   0xf   :  { %326 = vmatprep.mubr.bf16.mxu1 %v3356_v3  ;;  %369 = vmatprep.subr.bf16.mxu1 %v2588_v17  ;;  %v3141_v59 = vld [vmem:[%s4603_s3 + $0x94] ss:$8 sps:$4 sm:$0xff]   ;;  %v3139_v60 = vld [vmem:[%s4603_s3 + $0x90] ss:$8 sps:$4 sm:$0xff]   ;;  %v3144_v61 = vld [vmem:[%s4603_s3 + $0xa4] ss:$8 sps:$4 sm:$0xff]  }
  0x10   :  { %481 = vmatpush1.bf16.msra.mxu0 %v2581_v23  ;;  %v3142_v62 = vld [vmem:[%s4603_s3 + $0xa0] ss:$8 sps:$4 sm:$0xff]   ;;  %v3147_v63 = vld [vmem:[%s4603_s3 + $0xb4] ss:$8 sps:$4 sm:$0xff]   ;;  %v3145_v0 = vld [vmem:[%s4603_s3 + $0xb0] ss:$8 sps:$4 sm:$0xff]  }
  0x11   :  { %482 = vmatprep.subr.bf16.mxu0 %v2590_v27  ;;  %v3150_v1 = vld [vmem:[%s4603_s3 + $0xc4] ss:$8 sps:$4 sm:$0xff]   ;;  %v3148_v2 = vld [vmem:[%s4603_s3 + $0xc0] ss:$8 sps:$4 sm:$0xff]   ;;  %v3153_v4 = vld [vmem:[%s4603_s3 + $0xd4] ss:$8 sps:$4 sm:$0xff]  }
  0x12   :  { %370 = vmatpush1.bf16.msra.mxu1 %v2587_v22  ;;  %v3151_v5 = vld [vmem:[%s4603_s3 + $0xd0] ss:$8 sps:$4 sm:$0xff]   ;;  %v3156_v6 = vld [vmem:[%s4603_s3 + $0xe4] ss:$8 sps:$4 sm:$0xff]   ;;  %v3154_v7 = vld [vmem:[%s4603_s3 + $0xe0] ss:$8 sps:$4 sm:$0xff]  }
  0x13   :  { %593 = vmatprep.subr.bf16.mxu1 %v2584_v28  ;;  %v3159_v8 = vld [vmem:[%s4603_s3 + $0xf4] ss:$8 sps:$4 sm:$0xff]   ;;  %v3157_v9 = vld [vmem:[%s4603_s3 + $0xf0] ss:$8 sps:$4 sm:$0xff]   ;;  %v3162_v10 = vld [vmem:[%s4603_s3 + $0x104] ss:$8 sps:$4 sm:$0xff]  }
  0x14   :  { %483 = vmatpush1.bf16.msra.mxu0 %v2589_v32  ;;  %v3217_v12 = vld [vmem:[%s4603_s3 + $0x300] ss:$8 sps:$4 sm:$0xff]   ;;  %v3231_v14 = vld [vmem:[%s4603_s3 + $0x324] ss:$8 sps:$4 sm:$0xff]   ;;  %v3237_v16 = vld [vmem:[%s4603_s3 + $0x334] ss:$8 sps:$4 sm:$0xff]  }
  0x15   :  { %2594 = vmatmul.mubr.msk.bf16.gmra.mrb[4].mxu0 %vm229_vm0, %v3477_v29  ;;  %2597 = vmatmul.mubr.msk.bf16.gmra.mrb[4].mxu1 %vm229_vm0, %v3482_v30  ;;  %v3229_v15 = vld [vmem:[%s4603_s3 + $0x320] ss:$8 sps:$4 sm:$0xff]   ;;  %v3235_v17 = vld [vmem:[%s4603_s3 + $0x330] ss:$8 sps:$4 sm:$0xff]   ;;  %v3243_v18 = vld [vmem:[%s4603_s3 + $0x344] ss:$8 sps:$4 sm:$0xff]  }
  0x16   :  { %306 = vmatprep.mubr.bf16.mxu0 %v3356_v3  ;;  %336 = vmatprep.mubr.bf16.mxu1 %v3356_v3  ;;  %v3241_v19 = vld [vmem:[%s4603_s3 + $0x340] ss:$8 sps:$4 sm:$0xff]   ;;  %v3249_v20 = vld [vmem:[%s4603_s3 + $0x354] ss:$8 sps:$4 sm:$0xff]   ;;  %v3247_v21 = vld [vmem:[%s4603_s3 + $0x350] ss:$8 sps:$4 sm:$0xff]  }
  0x17   :  { %1678 = vmatprep.subr.bf16.mxu0 %v3114_v31  ;;  %v3255_v22 = vld [vmem:[%s4603_s3 + $0x364] ss:$8 sps:$4 sm:$0xff]   ;;  %v3253_v23 = vld [vmem:[%s4603_s3 + $0x360] ss:$8 sps:$4 sm:$0xff]   ;;  %v3261_v24 = vld [vmem:[%s4603_s3 + $0x374] ss:$8 sps:$4 sm:$0xff]  }
  0x18   :  { %v3259_v25 = vld [vmem:[%s4603_s3 + $0x370] ss:$8 sps:$4 sm:$0xff]   ;;  %v3267_v27 = vld [vmem:[%s4603_s3 + $0x384] ss:$8 sps:$4 sm:$0xff]   ;;  %v3265_v28 = vld [vmem:[%s4603_s3 + $0x380] ss:$8 sps:$4 sm:$0xff]  }
  0x19   :  { %v3271_v31 = vld [vmem:[%s4603_s3 + $0x390] ss:$8 sps:$4 sm:$0xff]   ;;  %vm4552_vm3 = vmpackc.low %vm2437_vm2, %vm2437_vm2 }
  0x1d   :  { %2595 = vmatmul.mubr.msk.bf16.gmra.mrb[8].mxu0 %vm229_vm0, %v3496_v33  ;;  %2598 = vmatmul.mubr.msk.bf16.gmra.mrb[8].mxu1 %vm229_vm0, %v3501_v34 }
  0x1e   :  { %346 = vmatprep.mubr.bf16.mxu1 %v3356_v3  ;;  %512 = vmatprep.mubr.bf16.mxu0 %v3356_v3 }
  0x25   :  { %2599 = vmatmul.mubr.msk.bf16.gmra.mrb[12].mxu1 %vm229_vm0, %v3512_v35  ;;  %2609 = vmatmul.mubr.msk.bf16.vlgmr.msra.gmra.mrb[12].mxu0 %vm229_vm0, %v3434_v11 }
  0x26   :  { %356 = vmatprep.mubr.bf16.mxu1 %v3356_v3  ;;  %522 = vmatprep.mubr.bf16.mxu0 %v3356_v3 }
  0x27   :  { %1679 = vmatpush1.bf16.msra.mxu0 %v3112_v36  ;;  %v3277_v36 = vld [vmem:[%s4603_s3 + $0x3a0] ss:$8 sps:$4 sm:$0xff]  }
  0x28   :  { %1680 = vmatprep.subr.bf16.mxu0 %v3117_v37 }
  0x2b   :  { %1681 = vmatpush1.bf16.msra.mxu0 %v3115_v38 }
  0x2c   :  { %1682 = vmatprep.subr.bf16.mxu0 %v3120_v39  ;;  %v3285_v39 = vld [vmem:[%s4603_s3 + $0x3b4] ss:$8 sps:$4 sm:$0xff]  }
  0x2d   :  { %2600 = vmatmul.mubr.msk.bf16.gmra.mrb[16].mxu1 %vm229_vm0, %v3535_v40  ;;  %2610 = vmatmul.mubr.msk.bf16.gmra.mrb[16].mxu0 %vm229_vm0, %v3477_v29 }
  0x2e   :  { %399 = vmatprep.mubr.bf16.mxu1 %v3356_v3  ;;  %532 = vmatprep.mubr.bf16.mxu0 %v3356_v3 }
  0x2f   :  { %1683 = vmatpush1.bf16.msra.mxu0 %v3118_v41 }
  0x30   :  { %1684 = vmatprep.subr.bf16.mxu0 %v3123_v42  ;;  %v3283_v42 = vld [vmem:[%s4603_s3 + $0x3b0] ss:$8 sps:$4 sm:$0xff]  }
  0x33   :  { %1685 = vmatpush1.bf16.msra.mxu0 %v3121_v43 }
  0x34   :  { %1686 = vmatprep.subr.bf16.mxu0 %v3126_v46 }
  0x35   :  { %2601 = vmatmul.mubr.msk.bf16.vlgmr.msra.gmra.mrb[20].mxu1 %vm229_vm0, %v3434_v11  ;;  %2611 = vmatmul.mubr.msk.bf16.gmra.mrb[20].mxu0 %vm229_vm0, %v3496_v33 }
  0x36   :  { %409 = vmatprep.mubr.bf16.mxu1 %v3356_v3  ;;  %594 = vmatpush1.bf16.msra.mxu1 %v2583_v47 }
  0x37   :  { %595 = vmatprep.subr.bf16.mxu1 %v2592_v49  ;;  %542 = vmatprep.mubr.bf16.mxu0 %v3356_v3 }
  0x38   :  { %1687 = vmatpush1.bf16.msra.mxu0 %v3124_v48 }
  0x39   :  { %1688 = vmatprep.subr.bf16.mxu0 %v3129_v50 }
  0x3a   :  { %596 = vmatpush1.bf16.msra.mxu1 %v2591_v51 }
  0x3c   :  { %1689 = vmatpush1.bf16.msra.mxu0 %v3127_v52 }
  0x3d   :  { %2602 = vmatmul.mubr.msk.bf16.gmra.mrb[24].mxu1 %vm229_vm0, %v3477_v29  ;;  %2612 = vmatmul.mubr.msk.bf16.gmra.mrb[24].mxu0 %vm229_vm0, %v3439_v13 }
  0x3e   :  { %419 = vmatprep.mubr.bf16.mxu1 %v3356_v3  ;;  %552 = vmatprep.mubr.bf16.mxu0 %v3356_v3 }
  0x3f   :  { %1690 = vmatprep.subr.bf16.mxu0 %v3132_v53 }
  0x40   :  { %1691 = vmatpush1.bf16.msra.mxu0 %v3130_v54 }
  0x41   :  { %1692 = vmatprep.subr.bf16.mxu0 %v3135_v55 }
  0x44   :  { %1693 = vmatpush1.bf16.msra.mxu0 %v3133_v56  ;;  %v3291_v56 = vld [vmem:[%s4603_s3 + $0x3c4] ss:$8 sps:$4 sm:$0xff]  }
  0x45   :  { %2603 = vmatmul.mubr.msk.bf16.gmra.mrb[28].mxu1 %vm229_vm0, %v3496_v33  ;;  %2613 = vmatmul.mubr.msk.bf16.gmra.mrb[28].mxu0 %vm229_vm0, %v3482_v30 }
  0x46   :  { %429 = vmatprep.mubr.bf16.mxu1 %v3356_v3  ;;  %562 = vmatprep.mubr.bf16.mxu0 %v3356_v3 }
  0x47   :  { %1694 = vmatprep.subr.bf16.mxu0 %v3138_v57 }
  0x48   :  { %1695 = vmatpush1.bf16.msra.mxu0 %v3136_v58 }
  0x49   :  { %1696 = vmatprep.subr.bf16.mxu0 %v3141_v59 }
  0x4c   :  { %1697 = vmatpush1.bf16.msra.mxu0 %v3139_v60  ;;  %v3289_v60 = vld [vmem:[%s4603_s3 + $0x3c0] ss:$8 sps:$4 sm:$0xff]  }
  0x4d   :  { %2604 = vmatmul.mubr.msk.bf16.gmra.mrb[32].mxu1 %vm229_vm0, %v3439_v13  ;;  %2614 = vmatmul.mubr.msk.bf16.gmra.mrb[32].mxu0 %vm229_vm0, %v3501_v34 }
  0x4e   :  { %439 = vmatprep.mubr.bf16.mxu1 %v3356_v3  ;;  %572 = vmatprep.mubr.bf16.mxu0 %v3356_v3 }
  0x4f   :  { %1698 = vmatprep.subr.bf16.mxu0 %v3144_v61 }
  0x50   :  { %1699 = vmatpush1.bf16.msra.mxu0 %v3142_v62 }
  0x51   :  { %1700 = vmatprep.subr.bf16.mxu0 %v3147_v63 }
  0x54   :  { %1701 = vmatpush1.bf16.msra.mxu0 %v3145_v0 }
  0x55   :  { %2605 = vmatmul.mubr.msk.bf16.gmra.mrb[36].mxu1 %vm229_vm0, %v3482_v30  ;;  %2615 = vmatmul.mubr.msk.bf16.gmra.mrb[36].mxu0 %vm229_vm0, %v3512_v35 }
  0x56   :  { %449 = vmatprep.mubr.bf16.mxu1 %v3356_v3  ;;  %582 = vmatprep.mubr.bf16.mxu0 %v3356_v3 }
  0x57   :  { %1702 = vmatprep.subr.bf16.mxu0 %v3150_v1 }
  0x58   :  { %1703 = vmatpush1.bf16.msra.mxu0 %v3148_v2 }
  0x59   :  { %1704 = vmatprep.subr.bf16.mxu0 %v3153_v4 }
  0x5c   :  { %1705 = vmatpush1.bf16.msra.mxu0 %v3151_v5 }
  0x5d   :  { %2606 = vmatmul.mubr.msk.bf16.gmra.mrb[40].mxu1 %vm229_vm0, %v3501_v34  ;;  %2616 = vmatmul.mubr.msk.bf16.gmra.mrb[40].mxu0 %vm229_vm0, %v3535_v40 }
  0x5e   :  { %459 = vmatprep.mubr.bf16.mxu1 %v3356_v3  ;;  %1706 = vmatprep.subr.bf16.mxu0 %v3156_v6  ;;  %v3297_v6 = vld [vmem:[%s4603_s3 + $0x3d4] ss:$8 sps:$4 sm:$0xff]  }
  0x60   :  { %1707 = vmatpush1.bf16.msra.mxu0 %v3154_v7 }
  0x61   :  { %1708 = vmatprep.subr.bf16.mxu0 %v3159_v8 }
  0x64   :  { %1709 = vmatpush1.bf16.msra.mxu0 %v3157_v9  ;;  %v3160_v9 = vld [vmem:[%s4603_s3 + $0x100] ss:$8 sps:$4 sm:$0xff]  }
  0x65   :  { %2607 = vmatmul.mubr.msk.bf16.gmra.mrb[44].mxu1 %vm229_vm0, %v3512_v35  ;;  %1791 = vmatprep.subr.bf16.mxu0 %v3162_v10 }
  0x66   :  { %469 = vmatprep.mubr.bf16.mxu1 %v3356_v3 }
  0x6d   :  { %2608 = vmatmul.mubr.msk.bf16.gmra.mrb[48].mxu1 %vm229_vm0, %v3535_v40 }
  0x6e   :  { %625 = vmatprep.mubr.bf16.mxu1 %v3356_v3 }
  0x75   :  { %2617 = vmatmul.mubr.msk.bf16.vlgmr.msra.gmra.mrb[52].mxu1 %vm229_vm0, %v3434_v11  ;;  %v3219_v11 = vld [vmem:[%s4603_s3 + $0x304] ss:$8 sps:$4 sm:$0xff]  }
  0x76   :  { %635 = vmatprep.mubr.bf16.mxu1 %v3356_v3  ;;  %2939 = vmatprep.subr.bf16.mxu1 %v3219_v11 }
  0x77   :  { %2955 = vmatpush1.bf16.msra.mxu1 %v3217_v12  ;;  %v3295_v12 = vld [vmem:[%s4603_s3 + $0x3d0] ss:$8 sps:$4 sm:$0xff]  }
  0x7d   :  { %2618 = vmatmul.mubr.msk.bf16.gmra.mrb[56].mxu1 %vm229_vm0, %v3477_v29  ;;  %v3752_v29 = vshrl.u32 %v69_v26, 7  ;;  %v3300_v26 = vld [vmem:[%s4603_s3 + $0x3e4] ss:$8 sps:$4 sm:$0xff]  }
  0x7e   :  { %645 = vmatprep.mubr.bf16.mxu1 %v3356_v3 }
  0x7f   :  { %v3761_v32 = vsub.s32 0, %v3752_v29 }
  0x85   :  { %2619 = vmatmul.mubr.msk.bf16.gmra.mrb[60].mxu1 %vm229_vm0, %v3496_v33  ;;  %v3766_v33 = vld [vmem:[%s4604_s2] sm:$0xff] }
  0x86   :  { %655 = vmatprep.mubr.bf16.mxu1 %v3356_v3  ;;  %v3777_v37 = vrot.slane %v3766_v33, %v3761_v32 }
  0x8d   :  { %2620 = vmatmul.mubr.msk.bf16.gmra.mrb[64].mxu1 %vm229_vm0, %v3439_v13  ;;  %v3225_v13 = vld [vmem:[%s4603_s3 + $0x314] ss:$8 sps:$4 sm:$0xff]  }
  0x8e   :  { %665 = vmatprep.mubr.bf16.mxu1 %v3356_v3  ;;  %2940 = vmatprep.subr.bf16.mxu1 %v3225_v13 }
  0x95   :  { %2621 = vmatmul.mubr.msk.bf16.gmra.mrb[68].mxu1 %vm229_vm0, %v3482_v30  ;;  %v3273_v30 = vld [vmem:[%s4603_s3 + $0x394] ss:$8 sps:$4 sm:$0xff]  }
  0x96   :  { %675 = vmatprep.mubr.bf16.mxu1 %v3356_v3 }
  0x9d   :  { %2622 = vmatmul.mubr.msk.bf16.gmra.mrb[72].mxu1 %vm229_vm0, %v3501_v34  ;;  %v75_v34 = vsub.s32 1, %v3752_v29 }
  0x9e   :  { %685 = vmatprep.mubr.bf16.mxu1 %v3356_v3 }
  0x9f   :  { %v3782_v38 = vrot.slane %v3766_v33, %v75_v34 }
  0xa5   :  { %2623 = vmatmul.mubr.msk.bf16.gmra.mrb[76].mxu1 %vm229_vm0, %v3512_v35  ;;  %v3279_v35 = vld [vmem:[%s4603_s3 + $0x3a4] ss:$8 sps:$4 sm:$0xff]  }
  0xa6   :  { %695 = vmatprep.mubr.bf16.mxu1 %v3356_v3  ;;  %v3223_v3 = vld [vmem:[%s4603_s3 + $0x310] ss:$8 sps:$4 sm:$0xff]  }
  0xa7   :  { %2956 = vmatpush1.bf16.msra.mxu1 %v3223_v3 }
  0xa8   :  { %2941 = vmatprep.subr.bf16.mxu1 %v3231_v14  ;;  %v3165_v14 = vld [vmem:[%s4603_s3 + $0x114] ss:$8 sps:$4 sm:$0xff]  }
  0xab   :  { %2957 = vmatpush1.bf16.msra.mxu1 %v3229_v15 }
  0xac   :  { %2942 = vmatprep.subr.bf16.mxu1 %v3237_v16 }
  0xad   :  { %2624 = vmatmul.mubr.msk.bf16.gmra.mrb[80].mxu1 %vm229_vm0, %v3535_v40 }
  0xaf   :  { %2958 = vmatpush1.bf16.msra.mxu1 %v3235_v17 }
  0xb0   :  { %2943 = vmatprep.subr.bf16.mxu1 %v3243_v18 }
  0xb3   :  { %2959 = vmatpush1.bf16.msra.mxu1 %v3241_v19 }
  0xb4   :  { %2944 = vmatprep.subr.bf16.mxu1 %v3249_v20 }
  0xb7   :  { %2960 = vmatpush1.bf16.msra.mxu1 %v3247_v21 }
  0xb8   :  { %2945 = vmatprep.subr.bf16.mxu1 %v3255_v22 }
  0xbb   :  { %2961 = vmatpush1.bf16.msra.mxu1 %v3253_v23 }
  0xbc   :  { %2946 = vmatprep.subr.bf16.mxu1 %v3261_v24 }
  0xbf   :  { %2962 = vmatpush1.bf16.msra.mxu1 %v3259_v25 }
  0xc0   :  { %2947 = vmatprep.subr.bf16.mxu1 %v3267_v27 }
  0xc3   :  { %2963 = vmatpush1.bf16.msra.mxu1 %v3265_v28  ;;  %v3163_v28 = vld [vmem:[%s4603_s3 + $0x110] ss:$8 sps:$4 sm:$0xff]  }
  0xc4   :  { %2948 = vmatprep.subr.bf16.mxu1 %v3273_v30 }
  0xc7   :  { %2964 = vmatpush1.bf16.msra.mxu1 %v3271_v31 }
  0xc8   :  { %2949 = vmatprep.subr.bf16.mxu1 %v3279_v35  ;;  %v3298_v35 = vld [vmem:[%s4603_s3 + $0x3e0] ss:$8 sps:$4 sm:$0xff]  }
  0xcb   :  { %2965 = vmatpush1.bf16.msra.mxu1 %v3277_v36 }
  0xcc   :  { %2950 = vmatprep.subr.bf16.mxu1 %v3285_v39 }
  0xcf   :  { %2966 = vmatpush1.bf16.msra.mxu1 %v3283_v42 }
  0xd0   :  { %2951 = vmatprep.subr.bf16.mxu1 %v3291_v56  ;;  %v3171_v56 = vld [vmem:[%s4603_s3 + $0x134] ss:$8 sps:$4 sm:$0xff]  }
  0xd3   :  { %2967 = vmatpush1.bf16.msra.mxu1 %v3289_v60 }
  0xd4   :  { %2952 = vmatprep.subr.bf16.mxu1 %v3297_v6 }
  0xd7   :  { %2968 = vmatpush1.bf16.msra.mxu1 %v3295_v12 }
  0xd8   :  { %2953 = vmatprep.subr.bf16.mxu1 %v3300_v26 }
  0xdb   :  { %2969 = vmatpush1.bf16.msra.mxu1 %v3298_v35 }
  0xe0   :  { %v288_v40 = vpop.f32.mrb[0].mxu0  ;;  %v318_v41 = vpop.f32.mrb[0].mxu1 }
  0xe1   :  { %v289_v43 = vadd.f32 %v288_v40, %v3777_v37  ;;  %v290_v44 = vpop.f32.mrb[1].mxu0  ;;  %v319_v45 = vadd.f32 %v318_v41, %v3777_v37  ;;  %v320_v46 = vpop.f32.mrb[1].mxu1  ;;  %v3168_v40 = vld [vmem:[%s4603_s3 + $0x124] ss:$8 sps:$4 sm:$0xff]  }
  0xe2   :  { %v291_v47 = vadd.f32 %v290_v44, %v3782_v38  ;;  %v292_v48 = vpop.f32.mrb[2].mxu0  ;;  %v321_v49 = vadd.f32 %v320_v46, %v3782_v38  ;;  %v322_v50 = vpop.f32.mrb[2].mxu1 }
  0xe3   :  { %v293_v51 = vadd.f32 %v292_v48, %v3777_v37  ;;  %v294_v52 = vpop.f32.mrb[3].mxu0  ;;  %v754_v53 = vmax.f32 %v319_v45, 0.0  ;;  %v323_v54 = vadd.f32 %v322_v50, %v3777_v37  ;;  %v324_v55 = vpop.f32.mrb[3].mxu1  ;;  %v706_v61 = vmax.f32 %v289_v43, 0.0  ;;  %v3166_v50 = vld [vmem:[%s4603_s3 + $0x120] ss:$8 sps:$4 sm:$0xff]  }
  0xe4   :  { %v295_v57 = vadd.f32 %v294_v52, %v3782_v38  ;;  %v755_v58 = vmax.f32 %v321_v49, 0.0  ;;  %v325_v59 = vadd.f32 %v324_v55, %v3782_v38  ;;  %v707_v0 = vmax.f32 %v291_v47, 0.0  ;;  %v3303_v47 = vld [vmem:[%s4603_s3 + $0x3f4] ss:$8 sps:$4 sm:$0xff]  }
  0xe5   :  { %v714_v62 = vmax.f32 %v293_v51, 0.0  ;;  %v762_v63 = vmax.f32 %v323_v54, 0.0  ;;  %2954 = vmatprep.subr.bf16.mxu1 %v3303_v47 }
  0xe6   :  { %v715_v1 = vmax.f32 %v295_v57, 0.0  ;;  %v763_v2 = vmax.f32 %v325_v59, 0.0  ;;  %v87_v59 = vsub.s32 4, %v3752_v29 }
  0xe7   :  { %v834_v4 = vpack.c.bf16 %v714_v62, %v706_v61  ;;  %v3804_v5 = vpack.c.bf16 %v762_v63, %v754_v53  ;;  %v3301_v53 = vld [vmem:[%s4603_s3 + $0x3f0] ss:$8 sps:$4 sm:$0xff]  }
  0xe8   :  { %v835_v7 = vpack.c.bf16 %v715_v1, %v707_v0  ;;  %v298_v8 = vpop.f32.mrb[4].mxu0  ;;  %v3812_v10 = vpack.c.bf16 %v763_v2, %v755_v58  ;;  %v328_v11 = vpop.f32.mrb[4].mxu1  ;;  %v91_v0 = vsub.s32 5, %v3752_v29  ;;  %2970 = vmatpush1.bf16.msra.mxu1 %v3301_v53 }
  0xe9   :  { %v299_v13 = vadd.f32 %v298_v8, %v3777_v37  ;;  %v300_v3 = vpop.f32.mrb[5].mxu0  ;;  %v329_v15 = vadd.f32 %v328_v11, %v3777_v37  ;;  %v330_v16 = vpop.f32.mrb[5].mxu1 }
  0xea   :  { %v301_v17 = vadd.f32 %v300_v3, %v3782_v38  ;;  %v302_v18 = vpop.f32.mrb[6].mxu0  ;;  %1710 = vmatprep.mubr.bf16.mxu0 %v835_v7  ;;  %v331_v19 = vadd.f32 %v330_v16, %v3782_v38  ;;  %v332_v20 = vpop.f32.mrb[6].mxu1  ;;  %v3873_v16 = vrot.slane %v3766_v33, %v87_v59 }
  0xeb   :  { %v303_v21 = vadd.f32 %v302_v18, %v3777_v37  ;;  %v304_v22 = vpop.f32.mrb[7].mxu0  ;;  %1711 = vmatmul.mubr.bf16.vlgmr.msra.gmra.mrb[44].mxu0 %v834_v4  ;;  %v770_v23 = vmax.f32 %v329_v15, 0.0  ;;  %v333_v24 = vadd.f32 %v332_v20, %v3777_v37  ;;  %v334_v25 = vpop.f32.mrb[7].mxu1  ;;  %v722_v36 = vmax.f32 %v299_v13, 0.0 }
  0xec   :  { %v305_v27 = vadd.f32 %v304_v22, %v3782_v38  ;;  %1792 = vmatpush1.bf16.msra.mxu0 %v3160_v9  ;;  %v771_v30 = vmax.f32 %v331_v19, 0.0  ;;  %v335_v31 = vadd.f32 %v334_v25, %v3782_v38  ;;  %v723_v42 = vmax.f32 %v301_v17, 0.0  ;;  %v3169_v9 = vld [vmem:[%s4603_s3 + $0x130] ss:$8 sps:$4 sm:$0xff]  }
  0xed   :  { %v730_v39 = vmax.f32 %v303_v21, 0.0  ;;  %1793 = vmatprep.subr.bf16.mxu0 %v3165_v14  ;;  %v778_v41 = vmax.f32 %v333_v24, 0.0  ;;  %v3174_v14 = vld [vmem:[%s4603_s3 + $0x144] ss:$8 sps:$4 sm:$0xff]   ;;  %v3876_v20 = vrot.slane %v3766_v33, %v91_v0  ;;  %v3172_v24 = vld [vmem:[%s4603_s3 + $0x140] ss:$8 sps:$4 sm:$0xff]  }
  0xee   :  { %v731_v43 = vmax.f32 %v305_v27, 0.0  ;;  %v779_v44 = vmax.f32 %v335_v31, 0.0 }
  0xef   :  { %v842_v45 = vpack.c.bf16 %v730_v39, %v722_v36  ;;  %v3840_v46 = vpack.c.bf16 %v778_v41, %v770_v23 }
  0xf0   :  { %v843_v48 = vpack.c.bf16 %v731_v43, %v723_v42  ;;  %v308_v49 = vpop.f32.mrb[8].mxu0  ;;  %1794 = vmatpush1.bf16.msra.mxu0 %v3163_v28  ;;  %v3848_v51 = vpack.c.bf16 %v779_v44, %v771_v30  ;;  %v338_v52 = vpop.f32.mrb[8].mxu1  ;;  %v3177_v28 = vld [vmem:[%s4603_s3 + $0x154] ss:$8 sps:$4 sm:$0xff]  }
  0xf1   :  { %v309_v54 = vadd.f32 %v308_v49, %v3777_v37  ;;  %v310_v55 = vpop.f32.mrb[9].mxu0  ;;  %1795 = vmatprep.subr.bf16.mxu0 %v3168_v40  ;;  %v339_v57 = vadd.f32 %v338_v52, %v3777_v37  ;;  %v340_v58 = vpop.f32.mrb[9].mxu1 }
  0xf2   :  { %v311_v60 = vadd.f32 %v310_v55, %v3782_v38  ;;  %v312_v61 = vpop.f32.mrb[10].mxu0  ;;  %1720 = vmatprep.mubr.bf16.mxu0 %v843_v48  ;;  %v341_v62 = vadd.f32 %v340_v58, %v3782_v38  ;;  %v342_v63 = vpop.f32.mrb[10].mxu1 }
  0xf3   :  { %v313_v1 = vadd.f32 %v312_v61, %v3777_v37  ;;  %v314_v2 = vpop.f32.mrb[11].mxu0  ;;  %1721 = vmatmul.mubr.bf16.gmra.mrb[48].mxu0 %v842_v45  ;;  %v786_v4 = vmax.f32 %v339_v57, 0.0  ;;  %v343_v6 = vadd.f32 %v342_v63, %v3777_v37  ;;  %v344_v7 = vpop.f32.mrb[11].mxu1  ;;  %v738_v13 = vmax.f32 %v309_v54, 0.0 }
  0xf4   :  { %v315_v8 = vadd.f32 %v314_v2, %v3782_v38  ;;  %1796 = vmatpush1.bf16.msra.mxu0 %v3166_v50  ;;  %v787_v11 = vmax.f32 %v341_v62, 0.0  ;;  %v345_v12 = vadd.f32 %v344_v7, %v3782_v38  ;;  %v739_v17 = vmax.f32 %v311_v60, 0.0  ;;  %v3175_v50 = vld [vmem:[%s4603_s3 + $0x150] ss:$8 sps:$4 sm:$0xff]   ;;  %v3178_v62 = vld [vmem:[%s4603_s3 + $0x160] ss:$8 sps:$4 sm:$0xff]  }
  0xf5   :  { %v746_v3 = vmax.f32 %v313_v1, 0.0  ;;  %1797 = vmatprep.subr.bf16.mxu0 %v3171_v56  ;;  %v794_v15 = vmax.f32 %v343_v6, 0.0  ;;  %v3180_v56 = vld [vmem:[%s4603_s3 + $0x164] ss:$8 sps:$4 sm:$0xff]  }
  0xf6   :  { %v747_v18 = vmax.f32 %v315_v8, 0.0  ;;  %v795_v19 = vmax.f32 %v345_v12, 0.0  ;;  %v79_v8 = vsub.s32 2, %v3752_v29 }
  0xf7   :  { %v850_v21 = vpack.c.bf16 %v746_v3, %v738_v13  ;;  %v3878_v22 = vpack.c.bf16 %v794_v15, %v786_v4  ;;  %v3183_v4 = vld [vmem:[%s4603_s3 + $0x174] ss:$8 sps:$4 sm:$0xff]   ;;  %v83_v3 = vsub.s32 3, %v3752_v29 }
  0xf8   :  { %v851_v23 = vpack.c.bf16 %v747_v18, %v739_v17  ;;  %1798 = vmatpush1.bf16.msra.mxu0 %v3169_v9  ;;  %v3883_v25 = vpack.c.bf16 %v795_v19, %v787_v11  ;;  %v348_v26 = vpop.f32.mrb[12].mxu1  ;;  %v514_v27 = vpop.f32.mrb[12].mxu0 }
  0xf9   :  { %1799 = vmatprep.subr.bf16.mxu0 %v3174_v14  ;;  %v349_v30 = vadd.f32 %v348_v26, %v3777_v37  ;;  %v350_v31 = vpop.f32.mrb[13].mxu1  ;;  %v515_v35 = vadd.f32 %v514_v27, %v3873_v16  ;;  %v516_v36 = vpop.f32.mrb[13].mxu0  ;;  %v3181_v26 = vld [vmem:[%s4603_s3 + $0x170] ss:$8 sps:$4 sm:$0xff]  }
  0xfa   :  { %1730 = vmatprep.mubr.bf16.mxu0 %v851_v23  ;;  %v351_v39 = vadd.f32 %v350_v31, %v3782_v38  ;;  %v352_v40 = vpop.f32.mrb[14].mxu1  ;;  %v517_v41 = vadd.f32 %v516_v36, %v3876_v20  ;;  %v518_v42 = vpop.f32.mrb[14].mxu0 }
  0xfb   :  { %1731 = vmatmul.mubr.bf16.gmra.mrb[52].mxu0 %v850_v21  ;;  %v802_v43 = vmax.f32 %v349_v30, 0.0  ;;  %v353_v44 = vadd.f32 %v352_v40, %v3777_v37  ;;  %v354_v45 = vpop.f32.mrb[15].mxu1  ;;  %v710_v47 = vmax.f32 %v515_v35, 0.0  ;;  %v519_v48 = vadd.f32 %v518_v42, %v3873_v16  ;;  %v520_v49 = vpop.f32.mrb[15].mxu0  ;;  %v3184_v42 = vld [vmem:[%s4603_s3 + $0x180] ss:$8 sps:$4 sm:$0xff]  }
  0xfc   :  { %1800 = vmatpush1.bf16.msra.mxu0 %v3172_v24  ;;  %1740 = vmatprep.mubr.bf16.mxu0 %v3812_v10  ;;  %v803_v52 = vmax.f32 %v351_v39, 0.0  ;;  %v355_v53 = vadd.f32 %v354_v45, %v3782_v38  ;;  %v711_v54 = vmax.f32 %v517_v41, 0.0  ;;  %v521_v55 = vadd.f32 %v520_v49, %v3876_v20 }
  0xfd   :  { %1801 = vmatprep.subr.bf16.mxu0 %v3177_v28  ;;  %v810_v57 = vmax.f32 %v353_v44, 0.0  ;;  %v718_v58 = vmax.f32 %v519_v48, 0.0  ;;  %v3936_v35 = vrot.slane %v3766_v33, %v79_v8  ;;  %v3939_v39 = vrot.slane %v3766_v33, %v83_v3  ;;  %v3189_v48 = vld [vmem:[%s4603_s3 + $0x194] ss:$8 sps:$4 sm:$0xff]  }
  0xfe   :  { %v811_v59 = vmax.f32 %v355_v53, 0.0  ;;  %v719_v60 = vmax.f32 %v521_v55, 0.0 }
  0xff   :  { %v3903_v10 = vpack.c.bf16 %v810_v57, %v802_v43  ;;  %v3905_v61 = vpack.c.bf16 %v718_v58, %v710_v47 }
 0x100   :  { %1802 = vmatpush1.bf16.msra.mxu0 %v3175_v50  ;;  %v3910_v63 = vpack.c.bf16 %v811_v59, %v803_v52  ;;  %v358_v0 = vpop.f32.mrb[16].mxu1  ;;  %v3912_v1 = vpack.c.bf16 %v719_v60, %v711_v54  ;;  %v524_v2 = vpop.f32.mrb[16].mxu0 }
 0x101   :  { %1803 = vmatprep.subr.bf16.mxu0 %v3180_v56  ;;  %v359_v6 = vadd.f32 %v358_v0, %v3777_v37  ;;  %v360_v7 = vpop.f32.mrb[17].mxu1  ;;  %v525_v9 = vadd.f32 %v524_v2, %v3873_v16  ;;  %v526_v11 = vpop.f32.mrb[17].mxu0 }
 0x102   :  { %v361_v12 = vadd.f32 %v360_v7, %v3782_v38  ;;  %v362_v13 = vpop.f32.mrb[18].mxu1  ;;  %v527_v14 = vadd.f32 %v526_v11, %v3876_v20  ;;  %v528_v15 = vpop.f32.mrb[18].mxu0 }
 0x103   :  { %1741 = vmatmul.mubr.bf16.gmra.mrb[56].mxu0 %v3804_v5  ;;  %v818_v17 = vmax.f32 %v359_v6, 0.0  ;;  %v363_v18 = vadd.f32 %v362_v13, %v3777_v37  ;;  %v364_v19 = vpop.f32.mrb[19].mxu1  ;;  %v726_v21 = vmax.f32 %v525_v9, 0.0  ;;  %v529_v23 = vadd.f32 %v528_v15, %v3873_v16  ;;  %v530_v24 = vpop.f32.mrb[19].mxu0  ;;  %v3186_v37 = vld [vmem:[%s4603_s3 + $0x184] ss:$8 sps:$4 sm:$0xff]  }
 0x104   :  { %1804 = vmatpush1.bf16.msra.mxu0 %v3178_v62  ;;  %1750 = vmatprep.mubr.bf16.mxu0 %v3848_v51  ;;  %v819_v27 = vmax.f32 %v361_v12, 0.0  ;;  %v365_v28 = vadd.f32 %v364_v19, %v3782_v38  ;;  %v727_v30 = vmax.f32 %v527_v14, 0.0  ;;  %v531_v5 = vadd.f32 %v530_v24, %v3876_v20  ;;  %v3192_v9 = vld [vmem:[%s4603_s3 + $0x1a4] ss:$8 sps:$4 sm:$0xff]   ;;  %v3190_v15 = vld [vmem:[%s4603_s3 + $0x1a0] ss:$8 sps:$4 sm:$0xff]  }
 0x105   :  { %1805 = vmatprep.subr.bf16.mxu0 %v3183_v4  ;;  %v826_v31 = vmax.f32 %v363_v18, 0.0  ;;  %v734_v51 = vmax.f32 %v529_v23, 0.0  ;;  %v3187_v4 = vld [vmem:[%s4603_s3 + $0x190] ss:$8 sps:$4 sm:$0xff]   ;;  %v3195_v23 = vld [vmem:[%s4603_s3 + $0x1b4] ss:$8 sps:$4 sm:$0xff]  }
 0x106   :  { %v827_v36 = vmax.f32 %v365_v28, 0.0  ;;  %v735_v40 = vmax.f32 %v531_v5, 0.0 }
 0x107   :  { %v3941_v41 = vpack.c.bf16 %v826_v31, %v818_v17  ;;  %v3943_v38 = vpack.c.bf16 %v734_v51, %v726_v21 }
 0x108   :  { %1806 = vmatpush1.bf16.msra.mxu0 %v3181_v26  ;;  %v3948_v43 = vpack.c.bf16 %v827_v36, %v819_v27  ;;  %v401_v44 = vpop.f32.mrb[20].mxu1  ;;  %v3950_v45 = vpack.c.bf16 %v735_v40, %v727_v30  ;;  %v534_v47 = vpop.f32.mrb[20].mxu0 }
 0x109   :  { %1807 = vmatprep.subr.bf16.mxu0 %v3186_v37  ;;  %v402_v49 = vadd.f32 %v401_v44, %v3936_v35  ;;  %v403_v50 = vpop.f32.mrb[21].mxu1  ;;  %v535_v52 = vadd.f32 %v534_v47, %v3873_v16  ;;  %v536_v53 = vpop.f32.mrb[21].mxu0 }
 0x10a   :  { %v404_v54 = vadd.f32 %v403_v50, %v3939_v39  ;;  %v405_v55 = vpop.f32.mrb[22].mxu1  ;;  %v537_v56 = vadd.f32 %v536_v53, %v3876_v20  ;;  %v538_v57 = vpop.f32.mrb[22].mxu0  ;;  %v3198_v53 = vld [vmem:[%s4603_s3 + $0x1c4] ss:$8 sps:$4 sm:$0xff]  }
 0x10b   :  { %1751 = vmatmul.mubr.bf16.gmra.mrb[60].mxu0 %v3840_v46  ;;  %v708_v58 = vmax.f32 %v402_v49, 0.0  ;;  %v406_v59 = vadd.f32 %v405_v55, %v3936_v35  ;;  %v407_v60 = vpop.f32.mrb[23].mxu1  ;;  %v742_v62 = vmax.f32 %v535_v52, 0.0  ;;  %v539_v0 = vadd.f32 %v538_v57, %v3873_v16  ;;  %v540_v2 = vpop.f32.mrb[23].mxu0 }
 0x10c   :  { %1808 = vmatpush1.bf16.msra.mxu0 %v3184_v42  ;;  %1760 = vmatprep.mubr.bf16.mxu0 %v3883_v25  ;;  %v709_v6 = vmax.f32 %v404_v54, 0.0  ;;  %v408_v7 = vadd.f32 %v407_v60, %v3939_v39  ;;  %v743_v8 = vmax.f32 %v537_v56, 0.0  ;;  %v541_v46 = vadd.f32 %v540_v2, %v3876_v20 }
 0x10d   :  { %1809 = vmatprep.subr.bf16.mxu0 %v3189_v48  ;;  %v716_v11 = vmax.f32 %v406_v59, 0.0  ;;  %v750_v12 = vmax.f32 %v539_v0, 0.0  ;;  %v3193_v48 = vld [vmem:[%s4603_s3 + $0x1b0] ss:$8 sps:$4 sm:$0xff]   ;;  %v3196_v59 = vld [vmem:[%s4603_s3 + $0x1c0] ss:$8 sps:$4 sm:$0xff]  }
 0x10e   :  { %v717_v13 = vmax.f32 %v408_v7, 0.0  ;;  %v751_v3 = vmax.f32 %v541_v46, 0.0 }
 0x10f   :  { %v3971_v25 = vpack.c.bf16 %v716_v11, %v708_v58  ;;  %v3973_v14 = vpack.c.bf16 %v750_v12, %v742_v62 }
 0x110   :  { %1810 = vmatpush1.bf16.msra.mxu0 %v3187_v4  ;;  %v3978_v17 = vpack.c.bf16 %v717_v13, %v709_v6  ;;  %v411_v18 = vpop.f32.mrb[24].mxu1  ;;  %v3980_v19 = vpack.c.bf16 %v751_v3, %v743_v8  ;;  %v544_v21 = vpop.f32.mrb[24].mxu0  ;;  %v3201_v4 = vld [vmem:[%s4603_s3 + $0x1d4] ss:$8 sps:$4 sm:$0xff]  }
 0x111   :  { %1811 = vmatprep.subr.bf16.mxu0 %v3192_v9  ;;  %v412_v24 = vadd.f32 %v411_v18, %v3936_v35  ;;  %v413_v26 = vpop.f32.mrb[25].mxu1  ;;  %v545_v27 = vadd.f32 %v544_v21, %v3873_v16  ;;  %v546_v28 = vpop.f32.mrb[25].mxu0 }
 0x112   :  { %v414_v30 = vadd.f32 %v413_v26, %v3939_v39  ;;  %v415_v5 = vpop.f32.mrb[26].mxu1  ;;  %v547_v37 = vadd.f32 %v546_v28, %v3876_v20  ;;  %v548_v31 = vpop.f32.mrb[26].mxu0  ;;  %v3199_v26 = vld [vmem:[%s4603_s3 + $0x1d0] ss:$8 sps:$4 sm:$0xff]  }
 0x113   :  { %1761 = vmatmul.mubr.bf16.gmra.mrb[64].mxu0 %v3878_v22  ;;  %v724_v51 = vmax.f32 %v412_v24, 0.0  ;;  %v416_v36 = vadd.f32 %v415_v5, %v3936_v35  ;;  %v417_v40 = vpop.f32.mrb[27].mxu1  ;;  %v758_v42 = vmax.f32 %v545_v27, 0.0  ;;  %v549_v44 = vadd.f32 %v548_v31, %v3873_v16  ;;  %v550_v47 = vpop.f32.mrb[27].mxu0  ;;  %v3204_v5 = vld [vmem:[%s4603_s3 + $0x1e4] ss:$8 sps:$4 sm:$0xff]  }
 0x114   :  { %1812 = vmatpush1.bf16.msra.mxu0 %v3190_v15  ;;  %1770 = vmatprep.mubr.bf16.mxu0 %v3910_v63  ;;  %v725_v49 = vmax.f32 %v414_v30, 0.0  ;;  %v418_v50 = vadd.f32 %v417_v40, %v3939_v39  ;;  %v759_v52 = vmax.f32 %v547_v37, 0.0  ;;  %v551_v22 = vadd.f32 %v550_v47, %v3876_v20 }
 0x115   :  { %1813 = vmatprep.subr.bf16.mxu0 %v3195_v23  ;;  %v732_v54 = vmax.f32 %v416_v36, 0.0  ;;  %v766_v55 = vmax.f32 %v549_v44, 0.0 }
 0x116   :  { %v733_v56 = vmax.f32 %v418_v50, 0.0  ;;  %v767_v57 = vmax.f32 %v551_v22, 0.0  ;;  %v3207_v50 = vld [vmem:[%s4603_s3 + $0x1f4] ss:$8 sps:$4 sm:$0xff]  }
 0x117   :  { %v4001_v63 = vpack.c.bf16 %v732_v54, %v724_v51  ;;  %v4003_v58 = vpack.c.bf16 %v766_v55, %v758_v42  ;;  %v3202_v42 = vld [vmem:[%s4603_s3 + $0x1e0] ss:$8 sps:$4 sm:$0xff]  }
 0x118   :  { %1814 = vmatpush1.bf16.msra.mxu0 %v3193_v48  ;;  %v4008_v60 = vpack.c.bf16 %v733_v56, %v725_v49  ;;  %v421_v62 = vpop.f32.mrb[28].mxu1  ;;  %v4010_v0 = vpack.c.bf16 %v767_v57, %v759_v52  ;;  %v554_v2 = vpop.f32.mrb[28].mxu0 }
 0x119   :  { %1815 = vmatprep.subr.bf16.mxu0 %v3198_v53  ;;  %v422_v6 = vadd.f32 %v421_v62, %v3936_v35  ;;  %v423_v7 = vpop.f32.mrb[29].mxu1  ;;  %v555_v8 = vadd.f32 %v554_v2, %v3873_v16  ;;  %v556_v46 = vpop.f32.mrb[29].mxu0 }
 0x11a   :  { %v424_v9 = vadd.f32 %v423_v7, %v3939_v39  ;;  %v425_v11 = vpop.f32.mrb[30].mxu1  ;;  %v557_v12 = vadd.f32 %v556_v46, %v3876_v20  ;;  %v558_v13 = vpop.f32.mrb[30].mxu0  ;;  %v3205_v46 = vld [vmem:[%s4603_s3 + $0x1f0] ss:$8 sps:$4 sm:$0xff]  }
 0x11b   :  { %1771 = vmatmul.mubr.bf16.gmra.mrb[68].mxu0 %v3903_v10  ;;  %v740_v3 = vmax.f32 %v422_v6, 0.0  ;;  %v426_v15 = vadd.f32 %v425_v11, %v3936_v35  ;;  %v427_v18 = vpop.f32.mrb[31].mxu1  ;;  %v774_v21 = vmax.f32 %v555_v8, 0.0  ;;  %v559_v23 = vadd.f32 %v558_v13, %v3873_v16  ;;  %v560_v24 = vpop.f32.mrb[31].mxu0  ;;  %v3210_v13 = vld [vmem:[%s4603_s3 + $0x204] ss:$8 sps:$4 sm:$0xff]  }
 0x11c   :  { %1816 = vmatpush1.bf16.msra.mxu0 %v3196_v59  ;;  %1780 = vmatprep.mubr.bf16.mxu0 %v3948_v43  ;;  %v741_v27 = vmax.f32 %v424_v9, 0.0  ;;  %v428_v28 = vadd.f32 %v427_v18, %v3939_v39  ;;  %v775_v30 = vmax.f32 %v557_v12, 0.0  ;;  %v561_v10 = vadd.f32 %v560_v24, %v3876_v20 }
 0x11d   :  { %1817 = vmatprep.subr.bf16.mxu0 %v3201_v4  ;;  %v748_v37 = vmax.f32 %v426_v15, 0.0  ;;  %v782_v31 = vmax.f32 %v559_v23, 0.0 }
 0x11e   :  { %v749_v51 = vmax.f32 %v428_v28, 0.0  ;;  %v783_v36 = vmax.f32 %v561_v10, 0.0  ;;  %v3213_v10 = vld [vmem:[%s4603_s3 + $0x214] ss:$8 sps:$4 sm:$0xff]  }
 0x11f   :  { %v4031_v43 = vpack.c.bf16 %v748_v37, %v740_v3  ;;  %v4033_v40 = vpack.c.bf16 %v782_v31, %v774_v21 }
 0x120   :  { %1818 = vmatpush1.bf16.msra.mxu0 %v3199_v26  ;;  %v4038_v44 = vpack.c.bf16 %v749_v51, %v741_v27  ;;  %v431_v47 = vpop.f32.mrb[32].mxu1  ;;  %v4040_v48 = vpack.c.bf16 %v783_v36, %v775_v30  ;;  %v564_v49 = vpop.f32.mrb[32].mxu0 }
 0x121   :  { %1819 = vmatprep.subr.bf16.mxu0 %v3204_v5  ;;  %v432_v52 = vadd.f32 %v431_v47, %v3936_v35  ;;  %v433_v22 = vpop.f32.mrb[33].mxu1  ;;  %v565_v53 = vadd.f32 %v564_v49, %v3873_v16  ;;  %v566_v54 = vpop.f32.mrb[33].mxu0 }
 0x122   :  { %v434_v55 = vadd.f32 %v433_v22, %v3939_v39  ;;  %v435_v56 = vpop.f32.mrb[34].mxu1  ;;  %v567_v57 = vadd.f32 %v566_v54, %v3876_v20  ;;  %v568_v59 = vpop.f32.mrb[34].mxu0 }
 0x123   :  { %1781 = vmatmul.mubr.bf16.gmra.mrb[72].mxu0 %v3941_v41  ;;  %v756_v62 = vmax.f32 %v432_v52, 0.0  ;;  %v436_v2 = vadd.f32 %v435_v56, %v3936_v35  ;;  %v437_v4 = vpop.f32.mrb[35].mxu1  ;;  %v790_v6 = vmax.f32 %v565_v53, 0.0  ;;  %v569_v7 = vadd.f32 %v568_v59, %v3873_v16  ;;  %v570_v8 = vpop.f32.mrb[35].mxu0  ;;  %v3211_v56 = vld [vmem:[%s4603_s3 + $0x210] ss:$8 sps:$4 sm:$0xff]  }
 0x124   :  { %1820 = vmatpush1.bf16.msra.mxu0 %v3202_v42  ;;  %1823 = vmatprep.mubr.bf16.mxu0 %v3978_v17  ;;  %v757_v9 = vmax.f32 %v434_v55, 0.0  ;;  %v438_v11 = vadd.f32 %v437_v4, %v3939_v39  ;;  %v791_v12 = vmax.f32 %v567_v57, 0.0  ;;  %v571_v41 = vadd.f32 %v570_v8, %v3876_v20  ;;  %v3208_v17 = vld [vmem:[%s4603_s3 + $0x200] ss:$8 sps:$4 sm:$0xff]  }
 0x125   :  { %1821 = vmatprep.subr.bf16.mxu0 %v3207_v50  ;;  %v764_v3 = vmax.f32 %v436_v2, 0.0  ;;  %v798_v15 = vmax.f32 %v569_v7, 0.0  ;;  %v3216_v2 = vld [vmem:[%s4603_s3 + $0x224] ss:$8 sps:$4 sm:$0xff]  }
 0x126   :  { %v765_v18 = vmax.f32 %v438_v11, 0.0  ;;  %v799_v21 = vmax.f32 %v571_v41, 0.0 }
 0x127   :  { %v4061_v23 = vpack.c.bf16 %v764_v3, %v756_v62  ;;  %v4063_v24 = vpack.c.bf16 %v798_v15, %v790_v6  ;;  %v3222_v3 = vld [vmem:[%s4603_s3 + $0x234] ss:$8 sps:$4 sm:$0xff]  }
 0x128   :  { %1822 = vmatpush1.bf16.msra.mxu0 %v3205_v46  ;;  %v4068_v26 = vpack.c.bf16 %v765_v18, %v757_v9  ;;  %v441_v27 = vpop.f32.mrb[36].mxu1  ;;  %v4070_v28 = vpack.c.bf16 %v799_v21, %v791_v12  ;;  %v574_v30 = vpop.f32.mrb[36].mxu0  ;;  %v3214_v9 = vld [vmem:[%s4603_s3 + $0x220] ss:$8 sps:$4 sm:$0xff]  }
 0x129   :  { %1904 = vmatprep.subr.bf16.mxu0 %v3210_v13  ;;  %v442_v5 = vadd.f32 %v441_v27, %v3936_v35  ;;  %v443_v37 = vpop.f32.mrb[37].mxu1  ;;  %v575_v31 = vadd.f32 %v574_v30, %v3873_v16  ;;  %v576_v51 = vpop.f32.mrb[37].mxu0 }
 0x12a   :  { %v444_v36 = vadd.f32 %v443_v37, %v3939_v39  ;;  %v445_v42 = vpop.f32.mrb[38].mxu1  ;;  %v577_v47 = vadd.f32 %v576_v51, %v3876_v20  ;;  %v578_v49 = vpop.f32.mrb[38].mxu0 }
 0x12b   :  { %1824 = vmatmul.mubr.bf16.vlgmr.msra.gmra.mrb[44].mxu0 %v3971_v25  ;;  %v772_v50 = vmax.f32 %v442_v5, 0.0  ;;  %v446_v52 = vadd.f32 %v445_v42, %v3936_v35  ;;  %v447_v22 = vpop.f32.mrb[39].mxu1  ;;  %v806_v53 = vmax.f32 %v575_v31, 0.0  ;;  %v579_v54 = vadd.f32 %v578_v49, %v3873_v16  ;;  %v580_v55 = vpop.f32.mrb[39].mxu0  ;;  %v3220_v49 = vld [vmem:[%s4603_s3 + $0x230] ss:$8 sps:$4 sm:$0xff]  }
 0x12c   :  { %1905 = vmatpush1.bf16.msra.mxu0 %v3208_v17  ;;  %1833 = vmatprep.mubr.bf16.mxu0 %v4008_v60  ;;  %v773_v57 = vmax.f32 %v444_v36, 0.0  ;;  %v448_v59 = vadd.f32 %v447_v22, %v3939_v39  ;;  %v807_v62 = vmax.f32 %v577_v47, 0.0  ;;  %v581_v25 = vadd.f32 %v580_v55, %v3876_v20 }
 0x12d   :  { %1906 = vmatprep.subr.bf16.mxu0 %v3213_v10  ;;  %v780_v4 = vmax.f32 %v446_v52, 0.0  ;;  %v814_v6 = vmax.f32 %v579_v54, 0.0 }
 0x12e   :  { %v781_v7 = vmax.f32 %v448_v59, 0.0  ;;  %v815_v8 = vmax.f32 %v581_v25, 0.0  ;;  %v3226_v59 = vld [vmem:[%s4603_s3 + $0x240] ss:$8 sps:$4 sm:$0xff]  }
 0x12f   :  { %v4091_v60 = vpack.c.bf16 %v780_v4, %v772_v50  ;;  %v4093_v46 = vpack.c.bf16 %v814_v6, %v806_v53  ;;  %v3228_v53 = vld [vmem:[%s4603_s3 + $0x244] ss:$8 sps:$4 sm:$0xff]  }
 0x130   :  { %1907 = vmatpush1.bf16.msra.mxu0 %v3211_v56  ;;  %v4098_v11 = vpack.c.bf16 %v781_v7, %v773_v57  ;;  %v451_v12 = vpop.f32.mrb[40].mxu1  ;;  %v4100_v41 = vpack.c.bf16 %v815_v8, %v807_v62  ;;  %v584_v13 = vpop.f32.mrb[40].mxu0 }
 0x131   :  { %1908 = vmatprep.subr.bf16.mxu0 %v3216_v2  ;;  %v452_v15 = vadd.f32 %v451_v12, %v3936_v35  ;;  %v453_v18 = vpop.f32.mrb[41].mxu1  ;;  %v585_v21 = vadd.f32 %v584_v13, %v3873_v16  ;;  %v586_v17 = vpop.f32.mrb[41].mxu0  ;;  %v3234_v2 = vld [vmem:[%s4603_s3 + $0x254] ss:$8 sps:$4 sm:$0xff]  }
 0x132   :  { %v454_v27 = vadd.f32 %v453_v18, %v3939_v39  ;;  %v455_v30 = vpop.f32.mrb[42].mxu1  ;;  %v587_v10 = vadd.f32 %v586_v17, %v3876_v20  ;;  %v588_v5 = vpop.f32.mrb[42].mxu0 }
 0x133   :  { %1834 = vmatmul.mubr.bf16.gmra.mrb[48].mxu0 %v4001_v63  ;;  %v788_v37 = vmax.f32 %v452_v15, 0.0  ;;  %v456_v31 = vadd.f32 %v455_v30, %v3936_v35  ;;  %v457_v51 = vpop.f32.mrb[43].mxu1  ;;  %v822_v36 = vmax.f32 %v585_v21, 0.0  ;;  %v589_v42 = vadd.f32 %v588_v5, %v3873_v16  ;;  %v590_v47 = vpop.f32.mrb[43].mxu0  ;;  %v3240_v21 = vld [vmem:[%s4603_s3 + $0x264] ss:$8 sps:$4 sm:$0xff]  }
 0x134   :  { %1909 = vmatpush1.bf16.msra.mxu0 %v3214_v9  ;;  %1843 = vmatprep.mubr.bf16.mxu0 %v4038_v44  ;;  %v789_v50 = vmax.f32 %v454_v27, 0.0  ;;  %v458_v52 = vadd.f32 %v457_v51, %v3939_v39  ;;  %v823_v22 = vmax.f32 %v587_v10, 0.0  ;;  %v591_v63 = vadd.f32 %v590_v47, %v3876_v20  ;;  %v3246_v5 = vld [vmem:[%s4603_s3 + $0x274] ss:$8 sps:$4 sm:$0xff]  }
 0x135   :  { %1910 = vmatprep.subr.bf16.mxu0 %v3222_v3  ;;  %v796_v16 = vmax.f32 %v456_v31, 0.0  ;;  %v830_v54 = vmax.f32 %v589_v42, 0.0  ;;  %v3232_v3 = vld [vmem:[%s4603_s3 + $0x250] ss:$8 sps:$4 sm:$0xff]  }
 0x136   :  { %v797_v55 = vmax.f32 %v458_v52, 0.0  ;;  %v831_v56 = vmax.f32 %v591_v63, 0.0  ;;  %v3244_v52 = vld [vmem:[%s4603_s3 + $0x270] ss:$8 sps:$4 sm:$0xff]  }
 0x137   :  { %v4121_v44 = vpack.c.bf16 %v796_v16, %v788_v37  ;;  %v4123_v57 = vpack.c.bf16 %v830_v54, %v822_v36 }
 0x138   :  { %1911 = vmatpush1.bf16.msra.mxu0 %v3220_v49  ;;  %v4128_v62 = vpack.c.bf16 %v797_v55, %v789_v50  ;;  %v461_v20 = vpop.f32.mrb[44].mxu1  ;;  %v4130_v25 = vpack.c.bf16 %v831_v56, %v823_v22  ;;  %v95_v50 = vsub.s32 6, %v3752_v29  ;;  %v3250_v55 = vld [vmem:[%s4603_s3 + $0x280] ss:$8 sps:$4 sm:$0xff]  }
 0x139   :  { %1912 = vmatprep.subr.bf16.mxu0 %v3228_v53  ;;  %v462_v4 = vadd.f32 %v461_v20, %v3936_v35  ;;  %v463_v6 = vpop.f32.mrb[45].mxu1  ;;  %v99_v53 = vsub.s32 7, %v3752_v29  ;;  %v3258_v20 = vld [vmem:[%s4603_s3 + $0x294] ss:$8 sps:$4 sm:$0xff]  }
 0x13a   :  { %v464_v7 = vadd.f32 %v463_v6, %v3939_v39  ;;  %v465_v8 = vpop.f32.mrb[46].mxu1 }
 0x13b   :  { %1844 = vmatmul.mubr.bf16.gmra.mrb[52].mxu0 %v4031_v43  ;;  %v804_v9 = vmax.f32 %v462_v4, 0.0  ;;  %v466_v12 = vadd.f32 %v465_v8, %v3936_v35  ;;  %v467_v13 = vpop.f32.mrb[47].mxu1 }
 0x13c   :  { %1913 = vmatpush1.bf16.msra.mxu0 %v3226_v59  ;;  %1853 = vmatprep.mubr.bf16.mxu0 %v4068_v26  ;;  %v805_v15 = vmax.f32 %v464_v7, 0.0  ;;  %v468_v18 = vadd.f32 %v467_v13, %v3939_v39  ;;  %v3238_v26 = vld [vmem:[%s4603_s3 + $0x260] ss:$8 sps:$4 sm:$0xff]   ;;  %v4182_v59 = vrot.slane %v3766_v33, %v99_v53 }
 0x13d   :  { %1914 = vmatprep.subr.bf16.mxu0 %v3234_v2  ;;  %v812_v43 = vmax.f32 %v466_v12, 0.0 }
 0x13e   :  { %v813_v17 = vmax.f32 %v468_v18, 0.0 }
 0x13f   :  { %v4147_v27 = vpack.c.bf16 %v812_v43, %v804_v9 }
 0x140   :  { %1915 = vmatpush1.bf16.msra.mxu0 %v3232_v3  ;;  %v4152_v30 = vpack.c.bf16 %v813_v17, %v805_v15  ;;  %v471_v10 = vpop.f32.mrb[48].mxu1  ;;  %v3264_v15 = vld [vmem:[%s4603_s3 + $0x2a4] ss:$8 sps:$4 sm:$0xff]  }
 0x141   :  { %1916 = vmatprep.subr.bf16.mxu0 %v3240_v21  ;;  %v472_v37 = vadd.f32 %v471_v10, %v3936_v35  ;;  %v473_v31 = vpop.f32.mrb[49].mxu1 }
 0x142   :  { %v474_v51 = vadd.f32 %v473_v31, %v3939_v39  ;;  %v475_v36 = vpop.f32.mrb[50].mxu1 }
 0x143   :  { %1854 = vmatmul.mubr.bf16.gmra.mrb[56].mxu0 %v4061_v23  ;;  %v820_v42 = vmax.f32 %v472_v37, 0.0  ;;  %v476_v47 = vadd.f32 %v475_v36, %v3936_v35  ;;  %v477_v49 = vpop.f32.mrb[51].mxu1  ;;  %v3252_v35 = vld [vmem:[%s4603_s3 + $0x284] ss:$8 sps:$4 sm:$0xff]  }
 0x144   :  { %1917 = vmatpush1.bf16.msra.mxu0 %v3238_v26  ;;  %1863 = vmatprep.mubr.bf16.mxu0 %v4098_v11  ;;  %v821_v22 = vmax.f32 %v474_v51, 0.0  ;;  %v478_v63 = vadd.f32 %v477_v49, %v3939_v39  ;;  %v4174_v11 = vrot.slane %v3766_v33, %v95_v50  ;;  %v3256_v33 = vld [vmem:[%s4603_s3 + $0x290] ss:$8 sps:$4 sm:$0xff]   ;;  %v3270_v26 = vld [vmem:[%s4603_s3 + $0x2b4] ss:$8 sps:$4 sm:$0xff]  }
 0x145   :  { %1918 = vmatprep.subr.bf16.mxu0 %v3246_v5  ;;  %v828_v23 = vmax.f32 %v476_v47, 0.0  ;;  %v3268_v47 = vld [vmem:[%s4603_s3 + $0x2b0] ss:$8 sps:$4 sm:$0xff]  }
 0x146   :  { %v829_v16 = vmax.f32 %v478_v63, 0.0 }
 0x147   :  { %v4171_v54 = vpack.c.bf16 %v828_v23, %v820_v42  ;;  %v3282_v23 = vld [vmem:[%s4603_s3 + $0x2d4] ss:$8 sps:$4 sm:$0xff]  }
 0x148   :  { %1919 = vmatpush1.bf16.msra.mxu0 %v3244_v52  ;;  %v4179_v39 = vpack.c.bf16 %v829_v16, %v821_v22  ;;  %v627_v56 = vpop.f32.mrb[52].mxu1  ;;  %v3276_v52 = vld [vmem:[%s4603_s3 + $0x2c4] ss:$8 sps:$4 sm:$0xff]  }
 0x149   :  { %1920 = vmatprep.subr.bf16.mxu0 %v3252_v35  ;;  %v628_v2 = vadd.f32 %v627_v56, %v4174_v11  ;;  %v629_v4 = vpop.f32.mrb[53].mxu1 }
 0x14a   :  { %v630_v6 = vadd.f32 %v629_v4, %v4182_v59  ;;  %v631_v7 = vpop.f32.mrb[54].mxu1 }
 0x14b   :  { %1864 = vmatmul.mubr.bf16.gmra.mrb[60].mxu0 %v4091_v60  ;;  %v712_v8 = vmax.f32 %v628_v2, 0.0  ;;  %v632_v9 = vadd.f32 %v631_v7, %v4174_v11  ;;  %v633_v12 = vpop.f32.mrb[55].mxu1  ;;  %v3280_v7 = vld [vmem:[%s4603_s3 + $0x2d0] ss:$8 sps:$4 sm:$0xff]  }
 0x14c   :  { %1921 = vmatpush1.bf16.msra.mxu0 %v3250_v55  ;;  %1873 = vmatprep.mubr.bf16.mxu0 %v4128_v62  ;;  %v713_v13 = vmax.f32 %v630_v6, 0.0  ;;  %v634_v3 = vadd.f32 %v633_v12, %v4182_v59  ;;  %v3262_v62 = vld [vmem:[%s4603_s3 + $0x2a0] ss:$8 sps:$4 sm:$0xff]  }
 0x14d   :  { %1922 = vmatprep.subr.bf16.mxu0 %v3258_v20  ;;  %v720_v60 = vmax.f32 %v632_v9, 0.0 }
 0x14e   :  { %v721_v18 = vmax.f32 %v634_v3, 0.0 }
 0x14f   :  { %v4199_v21 = vpack.c.bf16 %v720_v60, %v712_v8  ;;  %v3294_v60 = vld [vmem:[%s4603_s3 + $0x2f4] ss:$8 sps:$4 sm:$0xff]  }
 0x150   :  { %1923 = vmatpush1.bf16.msra.mxu0 %v3256_v33  ;;  %v4204_v43 = vpack.c.bf16 %v721_v18, %v713_v13  ;;  %v637_v17 = vpop.f32.mrb[56].mxu1 }
 0x151   :  { %1924 = vmatprep.subr.bf16.mxu0 %v3264_v15  ;;  %v638_v10 = vadd.f32 %v637_v17, %v4174_v11  ;;  %v639_v5 = vpop.f32.mrb[57].mxu1 }
 0x152   :  { %v640_v37 = vadd.f32 %v639_v5, %v4182_v59  ;;  %v641_v31 = vpop.f32.mrb[58].mxu1 }
 0x153   :  { %1874 = vmatmul.mubr.bf16.gmra.mrb[64].mxu0 %v4121_v44  ;;  %v728_v51 = vmax.f32 %v638_v10, 0.0  ;;  %v642_v36 = vadd.f32 %v641_v31, %v4174_v11  ;;  %v643_v42 = vpop.f32.mrb[59].mxu1  ;;  %v3292_v31 = vld [vmem:[%s4603_s3 + $0x2f0] ss:$8 sps:$4 sm:$0xff]  }
 0x154   :  { %1925 = vmatpush1.bf16.msra.mxu0 %v3262_v62  ;;  %1883 = vmatprep.mubr.bf16.mxu0 %v4152_v30  ;;  %v729_v49 = vmax.f32 %v640_v37, 0.0  ;;  %v644_v50 = vadd.f32 %v643_v42, %v4182_v59  ;;  %v3274_v30 = vld [vmem:[%s4603_s3 + $0x2c0] ss:$8 sps:$4 sm:$0xff]  }
 0x155   :  { %1926 = vmatprep.subr.bf16.mxu0 %v3270_v26  ;;  %v736_v44 = vmax.f32 %v642_v36, 0.0 }
 0x156   :  { %v737_v22 = vmax.f32 %v644_v50, 0.0 }
 0x157   :  { %v848_v63 = vpack.c.bf16 %v736_v44, %v728_v51 }
 0x158   :  { %1927 = vmatpush1.bf16.msra.mxu0 %v3268_v47  ;;  %v849_v53 = vpack.c.bf16 %v737_v22, %v729_v49  ;;  %v647_v35 = vpop.f32.mrb[60].mxu1 }
 0x159   :  { %1928 = vmatprep.subr.bf16.mxu0 %v3276_v52  ;;  %v648_v16 = vadd.f32 %v647_v35, %v4174_v11  ;;  %v649_v55 = vpop.f32.mrb[61].mxu1  ;;  %v3324_v52 = vld [vmem:[%s4603_s3 + $0x304] ss:$8 sps:$4 sm:$0xff]  }
 0x15a   :  { %v650_v56 = vadd.f32 %v649_v55, %v4182_v59  ;;  %v651_v20 = vpop.f32.mrb[62].mxu1  ;;  %2059 = vmatprep.mubr.bf16.mxu1 %v849_v53 }
 0x15b   :  { %1884 = vmatmul.mubr.bf16.gmra.mrb[68].mxu0 %v4147_v27  ;;  %v744_v2 = vmax.f32 %v648_v16, 0.0  ;;  %v652_v4 = vadd.f32 %v651_v20, %v4174_v11  ;;  %v653_v6 = vpop.f32.mrb[63].mxu1  ;;  %2060 = vmatmul.mubr.bf16.vlgmr.msra.gmra.mrb[84].mxu1 %v848_v63  ;;  %v3288_v27 = vld [vmem:[%s4603_s3 + $0x2e4] ss:$8 sps:$4 sm:$0xff]  }
 0x15c   :  { %1929 = vmatpush1.bf16.msra.mxu0 %v3274_v30  ;;  %1893 = vmatprep.mubr.bf16.mxu0 %v4179_v39  ;;  %v745_v8 = vmax.f32 %v650_v56, 0.0  ;;  %v654_v9 = vadd.f32 %v653_v6, %v4182_v59  ;;  %v3286_v39 = vld [vmem:[%s4603_s3 + $0x2e0] ss:$8 sps:$4 sm:$0xff]   ;;  %v3326_v56 = vld [vmem:[%s4603_s3 + $0x314] ss:$8 sps:$4 sm:$0xff]  }
 0x15d   :  { %1930 = vmatprep.subr.bf16.mxu0 %v3282_v23  ;;  %v752_v12 = vmax.f32 %v652_v4, 0.0  ;;  %v3325_v23 = vld [vmem:[%s4603_s3 + $0x300] ss:$8 sps:$4 sm:$0xff]   ;;  %v3327_v4 = vld [vmem:[%s4603_s3 + $0x310] ss:$8 sps:$4 sm:$0xff]  }
 0x15e   :  { %v753_v33 = vmax.f32 %v654_v9, 0.0 }
 0x15f   :  { %v856_v13 = vpack.c.bf16 %v752_v12, %v744_v2 }
 0x160   :  { %1931 = vmatpush1.bf16.msra.mxu0 %v3280_v7  ;;  %v857_v3 = vpack.c.bf16 %v753_v33, %v745_v8  ;;  %v657_v15 = vpop.f32.mrb[64].mxu1 }
 0x161   :  { %1932 = vmatprep.subr.bf16.mxu0 %v3288_v27  ;;  %v658_v18 = vadd.f32 %v657_v15, %v4174_v11  ;;  %v659_v62 = vpop.f32.mrb[65].mxu1 }
 0x162   :  { %v660_v17 = vadd.f32 %v659_v62, %v4182_v59  ;;  %v661_v26 = vpop.f32.mrb[66].mxu1  ;;  %2069 = vmatprep.mubr.bf16.mxu1 %v857_v3  ;;  %v3329_v3 = vld [vmem:[%s4603_s3 + $0x320] ss:$8 sps:$4 sm:$0xff]  }
 0x163   :  { %1894 = vmatmul.mubr.bf16.gmra.mrb[72].mxu0 %v4171_v54  ;;  %v760_v10 = vmax.f32 %v658_v18, 0.0  ;;  %v662_v5 = vadd.f32 %v661_v26, %v4174_v11  ;;  %v663_v37 = vpop.f32.mrb[67].mxu1  ;;  %2070 = vmatmul.mubr.bf16.gmra.mrb[88].mxu1 %v856_v13  ;;  %v3330_v18 = vld [vmem:[%s4603_s3 + $0x334] ss:$8 sps:$4 sm:$0xff]   ;;  %v3331_v26 = vld [vmem:[%s4603_s3 + $0x330] ss:$8 sps:$4 sm:$0xff]  }
 0x164   :  { %1933 = vmatpush1.bf16.msra.mxu0 %v3286_v39  ;;  %1936 = vmatprep.mubr.bf16.mxu0 %v3912_v1  ;;  %v761_v51 = vmax.f32 %v660_v17, 0.0  ;;  %v664_v36 = vadd.f32 %v663_v37, %v4182_v59 }
 0x165   :  { %1934 = vmatprep.subr.bf16.mxu0 %v3294_v60  ;;  %v768_v42 = vmax.f32 %v662_v5, 0.0 }
 0x166   :  { %v769_v47 = vmax.f32 %v664_v36, 0.0 }
 0x167   :  { %v864_v49 = vpack.c.bf16 %v768_v42, %v760_v10 }
 0x168   :  { %1935 = vmatpush1.bf16.msra.mxu0 %v3292_v31  ;;  %v865_v54 = vpack.c.bf16 %v769_v47, %v761_v51  ;;  %v667_v50 = vpop.f32.mrb[68].mxu1 }
 0x169   :  { %2017 = vmatprep.subr.bf16.mxu0 %v3324_v52  ;;  %v668_v44 = vadd.f32 %v667_v50, %v4174_v11  ;;  %v669_v22 = vpop.f32.mrb[69].mxu1 }
 0x16a   :  { %v670_v1 = vadd.f32 %v669_v22, %v4182_v59  ;;  %v671_v63 = vpop.f32.mrb[70].mxu1  ;;  %2079 = vmatprep.mubr.bf16.mxu1 %v865_v54  ;;  %v3333_v54 = vld [vmem:[%s4603_s3 + $0x340] ss:$8 sps:$4 sm:$0xff]  }
 0x16b   :  { %1937 = vmatmul.mubr.bf16.vlgmr.msra.gmra.mrb[44].mxu0 %v3905_v61  ;;  %v776_v30 = vmax.f32 %v668_v44, 0.0  ;;  %v672_v53 = vadd.f32 %v671_v63, %v4174_v11  ;;  %v673_v35 = vpop.f32.mrb[71].mxu1  ;;  %2080 = vmatmul.mubr.bf16.gmra.mrb[92].mxu1 %v864_v49  ;;  %v3334_v44 = vld [vmem:[%s4603_s3 + $0x354] ss:$8 sps:$4 sm:$0xff]   ;;  %v3335_v63 = vld [vmem:[%s4603_s3 + $0x350] ss:$8 sps:$4 sm:$0xff]  }
 0x16c   :  { %2018 = vmatpush1.bf16.msra.mxu0 %v3325_v23  ;;  %1946 = vmatprep.mubr.bf16.mxu0 %v3950_v45  ;;  %v777_v16 = vmax.f32 %v670_v1, 0.0  ;;  %v674_v55 = vadd.f32 %v673_v35, %v4182_v59  ;;  %v3328_v45 = vld [vmem:[%s4603_s3 + $0x324] ss:$8 sps:$4 sm:$0xff]  }
 0x16d   :  { %2019 = vmatprep.subr.bf16.mxu0 %v3326_v56  ;;  %v784_v61 = vmax.f32 %v672_v53, 0.0 }
 0x16e   :  { %v785_v20 = vmax.f32 %v674_v55, 0.0 }
 0x16f   :  { %v872_v2 = vpack.c.bf16 %v784_v61, %v776_v30 }
 0x170   :  { %2020 = vmatpush1.bf16.msra.mxu0 %v3327_v4  ;;  %v873_v6 = vpack.c.bf16 %v785_v20, %v777_v16  ;;  %v677_v7 = vpop.f32.mrb[72].mxu1 }
 0x171   :  { %2021 = vmatprep.subr.bf16.mxu0 %v3328_v45  ;;  %v678_v8 = vadd.f32 %v677_v7, %v4174_v11  ;;  %v679_v9 = vpop.f32.mrb[73].mxu1  ;;  %v3338_v7 = vld [vmem:[%s4603_s3 + $0x374] ss:$8 sps:$4 sm:$0xff]  }
 0x172   :  { %v680_v27 = vadd.f32 %v679_v9, %v4182_v59  ;;  %v681_v12 = vpop.f32.mrb[74].mxu1  ;;  %2089 = vmatprep.mubr.bf16.mxu1 %v873_v6 }
 0x173   :  { %1947 = vmatmul.mubr.bf16.gmra.mrb[48].mxu0 %v3943_v38  ;;  %v792_v33 = vmax.f32 %v678_v8, 0.0  ;;  %v682_v13 = vadd.f32 %v681_v12, %v4174_v11  ;;  %v683_v39 = vpop.f32.mrb[75].mxu1  ;;  %2090 = vmatmul.mubr.bf16.gmra.mrb[96].mxu1 %v872_v2  ;;  %v3337_v2 = vld [vmem:[%s4603_s3 + $0x360] ss:$8 sps:$4 sm:$0xff]   ;;  %v3339_v8 = vld [vmem:[%s4603_s3 + $0x370] ss:$8 sps:$4 sm:$0xff]  }
 0x174   :  { %2022 = vmatpush1.bf16.msra.mxu0 %v3329_v3  ;;  %1956 = vmatprep.mubr.bf16.mxu0 %v3980_v19  ;;  %v793_v15 = vmax.f32 %v680_v27, 0.0  ;;  %v684_v60 = vadd.f32 %v683_v39, %v4182_v59  ;;  %v3332_v19 = vld [vmem:[%s4603_s3 + $0x344] ss:$8 sps:$4 sm:$0xff]   ;;  %v3342_v27 = vld [vmem:[%s4603_s3 + $0x394] ss:$8 sps:$4 sm:$0xff]  }
 0x175   :  { %2023 = vmatprep.subr.bf16.mxu0 %v3330_v18  ;;  %v800_v38 = vmax.f32 %v682_v13, 0.0  ;;  %v3343_v12 = vld [vmem:[%s4603_s3 + $0x390] ss:$8 sps:$4 sm:$0xff]   ;;  %v3350_v39 = vld [vmem:[%s4603_s3 + $0x3d4] ss:$8 sps:$4 sm:$0xff]   ;;  %v3306_v18 = vld [vmem:[%s4605_s5 + $0x48] sm:$0xff]  }
 0x176   :  { %v801_v62 = vmax.f32 %v684_v60, 0.0  ;;  %v3347_v13 = vld [vmem:[%s4603_s3 + $0x3b0] ss:$8 sps:$4 sm:$0xff]  }
 0x177   :  { %v880_v17 = vpack.c.bf16 %v800_v38, %v792_v33  ;;  %v3346_v33 = vld [vmem:[%s4603_s3 + $0x3b4] ss:$8 sps:$4 sm:$0xff]   ;;  %v3351_v3 = vld [vmem:[%s4603_s3 + $0x3d0] ss:$8 sps:$4 sm:$0xff]   ;;  %v3307_v38 = vld [vmem:[%s4605_s5 + $0x8] sm:$0xff]  }
 0x178   :  { %2024 = vmatpush1.bf16.msra.mxu0 %v3331_v26  ;;  %v881_v10 = vpack.c.bf16 %v801_v62, %v793_v15  ;;  %v687_v5 = vpop.f32.mrb[76].mxu1  ;;  %v3354_v15 = vld [vmem:[%s4603_s3 + $0x3f4] ss:$8 sps:$4 sm:$0xff]   ;;  %v3355_v60 = vld [vmem:[%s4603_s3 + $0x3f0] ss:$8 sps:$4 sm:$0xff]  }
 0x179   :  { %2025 = vmatprep.subr.bf16.mxu0 %v3332_v19  ;;  %v688_v37 = vadd.f32 %v687_v5, %v4174_v11  ;;  %v689_v31 = vpop.f32.mrb[77].mxu1  ;;  %v3309_v62 = vld [vmem:[%s4605_s5 + $0x10] sm:$0xff]   ;;  %v3311_v26 = vld [vmem:[%s4605_s5 + $0x18] sm:$0xff]   ;;  %v3313_v5 = vld [vmem:[%s4605_s5 + $0x20] sm:$0xff]  }
 0x17a   :  { %v690_v51 = vadd.f32 %v689_v31, %v4182_v59  ;;  %v691_v36 = vpop.f32.mrb[78].mxu1  ;;  %2099 = vmatprep.mubr.bf16.mxu1 %v881_v10  ;;  %v3312_v10 = vld [vmem:[%s4605_s5 + $0x60] sm:$0xff]   ;;  %v3314_v19 = vld [vmem:[%s4605_s5 + $0x68] sm:$0xff]   ;;  %v3316_v31 = vld [vmem:[%s4605_s5 + $0x70] sm:$0xff]  }
 0x17b   :  { %1957 = vmatmul.mubr.bf16.gmra.mrb[52].mxu0 %v3973_v14  ;;  %v808_v42 = vmax.f32 %v688_v37, 0.0  ;;  %v692_v47 = vadd.f32 %v691_v36, %v4174_v11  ;;  %v693_v49 = vpop.f32.mrb[79].mxu1  ;;  %2100 = vmatmul.mubr.bf16.gmra.mrb[100].mxu1 %v880_v17  ;;  %v3310_v17 = vld [vmem:[%s4605_s5 + $0x58] sm:$0xff]   ;;  %v3315_v37 = vld [vmem:[%s4605_s5 + $0x28] sm:$0xff]  }
 0x17c   :  { %2026 = vmatpush1.bf16.msra.mxu0 %v3333_v54  ;;  %1966 = vmatprep.mubr.bf16.mxu0 %v4010_v0  ;;  %v809_v50 = vmax.f32 %v690_v51, 0.0  ;;  %v694_v52 = vadd.f32 %v693_v49, %v4182_v59  ;;  %v3336_v0 = vld [vmem:[%s4603_s3 + $0x364] ss:$8 sps:$4 sm:$0xff]   ;;  %v3317_v51 = vld [vmem:[%s4605_s5 + $0x30] sm:$0xff]   ;;  %v3318_v36 = vld [vmem:[%s4605_s5 + $0x78] sm:$0xff]  }
 0x17d   :  { %2027 = vmatprep.subr.bf16.mxu0 %v3334_v44  ;;  %v816_v14 = vmax.f32 %v692_v47, 0.0 }
 0x17e   :  { %v817_v22 = vmax.f32 %v694_v52, 0.0 }
 0x17f   :  { %v888_v1 = vpack.c.bf16 %v816_v14, %v808_v42  ;;  %v3319_v42 = vld [vmem:[%s4605_s5 + $0x38] sm:$0xff]  }
 0x180   :  { %2028 = vmatpush1.bf16.msra.mxu0 %v3335_v63  ;;  %v889_v30 = vpack.c.bf16 %v817_v22, %v809_v50  ;;  %v697_v53 = vpop.f32.mrb[80].mxu1 }
 0x181   :  { %2029 = vmatprep.subr.bf16.mxu0 %v3336_v0  ;;  %v698_v35 = vadd.f32 %v697_v53, %v4174_v11  ;;  %v699_v23 = vpop.f32.mrb[81].mxu1 }
 0x182   :  { %v700_v16 = vadd.f32 %v699_v23, %v4182_v59  ;;  %v701_v55 = vpop.f32.mrb[82].mxu1  ;;  %2109 = vmatprep.mubr.bf16.mxu1 %v889_v30  ;;  %v1026_v30 = vld [vmem:[%s4606_s4] sm:$0x3] }
 0x183   :  { %1967 = vmatmul.mubr.bf16.gmra.mrb[56].mxu0 %v4003_v58  ;;  %v824_v56 = vmax.f32 %v698_v35, 0.0  ;;  %v702_v61 = vadd.f32 %v701_v55, %v4174_v11  ;;  %v703_v20 = vpop.f32.mrb[83].mxu1  ;;  %2110 = vmatmul.mubr.bf16.gmra.mrb[104].mxu1 %v888_v1  ;;  %v4437_v35 = vrot.slane %v1026_v30, %v3761_v32  ;;  %v4441_v23 = vrot.slane %v1026_v30, %v75_v34 }
 0x184   :  { %2030 = vmatpush1.bf16.msra.mxu0 %v3337_v2  ;;  %1976 = vmatprep.mubr.bf16.mxu0 %v4040_v48  ;;  %v825_v4 = vmax.f32 %v700_v16, 0.0  ;;  %v704_v6 = vadd.f32 %v703_v20, %v4182_v59  ;;  %v3340_v48 = vld [vmem:[%s4603_s3 + $0x384] ss:$8 sps:$4 sm:$0xff]   ;;  %v3341_v59 = vld [vmem:[%s4603_s3 + $0x380] ss:$8 sps:$4 sm:$0xff]  }
 0x185   :  { %2031 = vmatprep.subr.bf16.mxu0 %v3338_v7  ;;  %v832_v58 = vmax.f32 %v702_v61, 0.0 }
 0x186   :  { %v833_v45 = vmax.f32 %v704_v6, 0.0 }
 0x187   :  { %v896_v11 = vpack.c.bf16 %v832_v58, %v824_v56 }
 0x188   :  { %2032 = vmatpush1.bf16.msra.mxu0 %v3339_v8  ;;  %v897_v9 = vpack.c.bf16 %v833_v45, %v825_v4 }
 0x189   :  { %2033 = vmatprep.subr.bf16.mxu0 %v3340_v48 }
 0x18a   :  { %2119 = vmatprep.mubr.bf16.mxu1 %v897_v9 }
 0x18b   :  { %1977 = vmatmul.mubr.bf16.gmra.mrb[60].mxu0 %v4033_v40  ;;  %2120 = vmatmul.mubr.bf16.gmra.mrb[108].mxu1 %v896_v11  ;;  %v3344_v40 = vld [vmem:[%s4603_s3 + $0x3a4] ss:$8 sps:$4 sm:$0xff]  }
 0x18c   :  { %2034 = vmatpush1.bf16.msra.mxu0 %v3341_v59  ;;  %1986 = vmatprep.mubr.bf16.mxu0 %v4070_v28  ;;  %v3345_v28 = vld [vmem:[%s4603_s3 + $0x3a0] ss:$8 sps:$4 sm:$0xff]  }
 0x18d   :  { %2035 = vmatprep.subr.bf16.mxu0 %v3342_v27 }
 0x190   :  { %2036 = vmatpush1.bf16.msra.mxu0 %v3343_v12 }
 0x191   :  { %2037 = vmatprep.subr.bf16.mxu0 %v3344_v40 }
 0x193   :  { %1987 = vmatmul.mubr.bf16.gmra.mrb[64].mxu0 %v4063_v24  ;;  %v3348_v24 = vld [vmem:[%s4603_s3 + $0x3c4] ss:$8 sps:$4 sm:$0xff]  }
 0x194   :  { %2038 = vmatpush1.bf16.msra.mxu0 %v3345_v28  ;;  %1996 = vmatprep.mubr.bf16.mxu0 %v4100_v41  ;;  %v3349_v41 = vld [vmem:[%s4603_s3 + $0x3c0] ss:$8 sps:$4 sm:$0xff]  }
 0x195   :  { %2039 = vmatprep.subr.bf16.mxu0 %v3346_v33 }
 0x198   :  { %2040 = vmatpush1.bf16.msra.mxu0 %v3347_v13 }
 0x199   :  { %2041 = vmatprep.subr.bf16.mxu0 %v3348_v24 }
 0x19b   :  { %1997 = vmatmul.mubr.bf16.gmra.mrb[68].mxu0 %v4093_v46  ;;  %v3352_v46 = vld [vmem:[%s4603_s3 + $0x3e4] ss:$8 sps:$4 sm:$0xff]  }
 0x19c   :  { %2042 = vmatpush1.bf16.msra.mxu0 %v3349_v41  ;;  %2006 = vmatprep.mubr.bf16.mxu0 %v4130_v25  ;;  %v3353_v25 = vld [vmem:[%s4603_s3 + $0x3e0] ss:$8 sps:$4 sm:$0xff]  }
 0x19d   :  { %2043 = vmatprep.subr.bf16.mxu0 %v3350_v39 }
 0x1a0   :  { %2044 = vmatpush1.bf16.msra.mxu0 %v3351_v3 }
 0x1a1   :  { %2045 = vmatprep.subr.bf16.mxu0 %v3352_v46 }
 0x1a3   :  { %2007 = vmatmul.mubr.bf16.gmra.mrb[72].mxu0 %v4123_v57  ;;  %v3304_v57 = vld [vmem:[%s4605_s5 + $0x40] sm:$0xff]  }
 0x1a4   :  { %2046 = vmatpush1.bf16.msra.mxu0 %v3353_v25  ;;  %2049 = vmatprep.mubr.bf16.mxu0 %v4204_v43  ;;  %v3305_v43 = vld [vmem:[%s4605_s5] sm:$0xff]  }
 0x1a5   :  { %2047 = vmatprep.subr.bf16.mxu0 %v3354_v15  ;;  %2787 = vmatprep.subr.bf16.mxu1 %v3304_v57 }
 0x1a6   :  { %2788 = vmatpush3.bf16.msra.mxu1 %v3305_v43 }
 0x1a7   :  { %2789 = vmatprep.subr.bf16.mxu1 %v3306_v18 }
 0x1a8   :  { %2048 = vmatpush1.bf16.msra.mxu0 %v3355_v60 }
 0x1aa   :  { %2790 = vmatpush3.bf16.msra.mxu1 %v3307_v38 }
 0x1ab   :  { %2050 = vmatmul.mubr.bf16.vlgmr.msra.gmra.mrb[44].mxu0 %v4199_v21  ;;  %v3308_v21 = vld [vmem:[%s4605_s5 + $0x50] sm:$0xff]  }
 0x1ac   :  { %2791 = vmatprep.subr.bf16.mxu1 %v3308_v21 }
 0x1ae   :  { %2792 = vmatpush3.bf16.msra.mxu1 %v3309_v62 }
 0x1af   :  { %2793 = vmatprep.subr.bf16.mxu1 %v3310_v17 }
 0x1b2   :  { %2794 = vmatpush3.bf16.msra.mxu1 %v3311_v26 }
 0x1b3   :  { %2795 = vmatprep.subr.bf16.mxu1 %v3312_v10 }
 0x1b6   :  { %2796 = vmatpush3.bf16.msra.mxu1 %v3313_v5 }
 0x1b7   :  { %2797 = vmatprep.subr.bf16.mxu1 %v3314_v19 }
 0x1ba   :  { %2798 = vmatpush3.bf16.msra.mxu1 %v3315_v37 }
 0x1bb   :  { %2799 = vmatprep.subr.bf16.mxu1 %v3316_v31 }
 0x1be   :  { %2800 = vmatpush3.bf16.msra.mxu1 %v3317_v51 }
 0x1bf   :  { %2801 = vmatprep.subr.bf16.mxu1 %v3318_v36 }
 0x1c2   :  { %2802 = vmatpush3.bf16.msra.mxu1 %v3319_v42 }
 0x22e   :  { %v2061_v47 = vpop.f32.mrb[84].mxu1 }
 0x22f   :  { %v2063_v49 = vpop.f32.mrb[85].mxu1 }
 0x230   :  { %v2065_v54 = vpop.f32.mrb[86].mxu1 }
 0x231   :  { %v2067_v50 = vpop.f32.mrb[87].mxu1 }
 0x236   :  { %v2071_v52 = vpop.f32.mrb[88].mxu1 }
 0x237   :  { %v2073_v44 = vpop.f32.mrb[89].mxu1 }
 0x238   :  { %v2075_v14 = vpop.f32.mrb[90].mxu1 }
 0x239   :  { %v2077_v22 = vpop.f32.mrb[91].mxu1 }
 0x23e   :  { %v2081_v1 = vpop.f32.mrb[92].mxu1 }
 0x23f   :  { %v4431_v63 = vpop.f32.mrb[93].mxu1 }
 0x240   :  { %v2085_v53 = vpop.f32.mrb[94].mxu1 }
 0x241   :  { %v2087_v0 = vpop.f32.mrb[95].mxu1 }
 0x246   :  { %v1948_v16 = vpop.f32.mrb[48].mxu0  ;;  %v4443_v55 = vpop.f32.mrb[96].mxu1 }
 0x247   :  { %v2975_v56 = vadd.f32 %v1948_v16, %v4437_v35  ;;  %v1950_v61 = vpop.f32.mrb[49].mxu0  ;;  %v4446_v20 = vpop.f32.mrb[97].mxu1 }
 0x248   :  { %v2977_v2 = vadd.f32 %v1950_v61, %v4441_v23  ;;  %v1952_v4 = vpop.f32.mrb[50].mxu0  ;;  %v4449_v6 = vpop.f32.mrb[98].mxu1 }
 0x249   :  { %v2979_v7 = vadd.f32 %v1952_v4, %v4437_v35  ;;  %v2976_v58 = vadd.f32 %v2975_v56, %v2061_v47  ;;  %v1954_v45 = vpop.f32.mrb[51].mxu0  ;;  %v4452_v29 = vpop.f32.mrb[99].mxu1 }
 0x24a   :  { %v2981_v34 = vadd.f32 %v1954_v45, %v4441_v23  ;;  %v2978_v11 = vadd.f32 %v2977_v2, %v2063_v49 }
 0x24b   :  { %v2980_v8 = vadd.f32 %v2979_v7, %v2065_v54  ;;  %v2134_v48 = vmax.f32 %v2976_v58, 0.0 }
 0x24c   :  { %v2982_v9 = vadd.f32 %v2981_v34, %v2067_v50  ;;  %v2135_v27 = vmax.f32 %v2978_v11, 0.0 }
 0x24d   :  { %v2136_v59 = vmax.f32 %v2980_v8, 0.0 }
 0x24e   :  { %v2137_v12 = vmax.f32 %v2982_v9, 0.0  ;;  %v1958_v40 = vpop.f32.mrb[52].mxu0  ;;  %v4455_v28 = vpop.f32.mrb[100].mxu1 }
 0x24f   :  { %v4457_v33 = vpack.c.bf16 %v2136_v59, %v2134_v48  ;;  %v2983_v13 = vadd.f32 %v1958_v40, %v4437_v35  ;;  %v1960_v24 = vpop.f32.mrb[53].mxu0  ;;  %v4460_v41 = vpop.f32.mrb[101].mxu1 }
 0x250   :  { %v4462_v39 = vpack.c.bf16 %v2137_v12, %v2135_v27  ;;  %v2985_v3 = vadd.f32 %v1960_v24, %v4441_v23  ;;  %v1962_v46 = vpop.f32.mrb[54].mxu0  ;;  %v4465_v25 = vpop.f32.mrb[102].mxu1 }
 0x251   :  { %v2987_v15 = vadd.f32 %v1962_v46, %v4437_v35  ;;  %v2984_v60 = vadd.f32 %v2983_v13, %v2071_v52  ;;  %v1964_v57 = vpop.f32.mrb[55].mxu0  ;;  %v4468_v43 = vpop.f32.mrb[103].mxu1 }
 0x252   :  { %v2989_v18 = vadd.f32 %v1964_v57, %v4441_v23  ;;  %v2986_v38 = vadd.f32 %v2985_v3, %v2073_v44 }
 0x253   :  { %v2988_v21 = vadd.f32 %v2987_v15, %v2075_v14  ;;  %v2138_v17 = vmax.f32 %v2984_v60, 0.0 }
 0x254   :  { %v2990_v62 = vadd.f32 %v2989_v18, %v2077_v22  ;;  %v2139_v10 = vmax.f32 %v2986_v38, 0.0 }
 0x255   :  { %v2140_v26 = vmax.f32 %v2988_v21, 0.0 }
 0x256   :  { %v2141_v5 = vmax.f32 %v2990_v62, 0.0  ;;  %v1968_v19 = vpop.f32.mrb[56].mxu0  ;;  %v4471_v37 = vpop.f32.mrb[104].mxu1 }
 0x257   :  { %v4473_v31 = vpack.c.bf16 %v2140_v26, %v2138_v17  ;;  %v2991_v51 = vadd.f32 %v1968_v19, %v4437_v35  ;;  %v1970_v36 = vpop.f32.mrb[57].mxu0  ;;  %v4476_v42 = vpop.f32.mrb[105].mxu1 }
 0x258   :  { %v4478_v47 = vpack.c.bf16 %v2141_v5, %v2139_v10  ;;  %v2993_v49 = vadd.f32 %v1970_v36, %v4441_v23  ;;  %v1972_v54 = vpop.f32.mrb[58].mxu0  ;;  %v4481_v50 = vpop.f32.mrb[106].mxu1 }
 0x259   :  { %v2995_v52 = vadd.f32 %v1972_v54, %v4437_v35  ;;  %v2992_v44 = vadd.f32 %v2991_v51, %v2081_v1  ;;  %v1974_v14 = vpop.f32.mrb[59].mxu0  ;;  %v2117_v22 = vpop.f32.mrb[107].mxu1 }
 0x25a   :  { %v2997_v30 = vadd.f32 %v1974_v14, %v4441_v23  ;;  %v2994_v16 = vadd.f32 %v2993_v49, %v4431_v63 }
 0x25b   :  { %v2996_v56 = vadd.f32 %v2995_v52, %v2085_v53  ;;  %v2142_v2 = vmax.f32 %v2992_v44, 0.0 }
 0x25c   :  { %v2998_v61 = vadd.f32 %v2997_v30, %v2087_v0  ;;  %v2143_v7 = vmax.f32 %v2994_v16, 0.0 }
 0x25d   :  { %v2144_v4 = vmax.f32 %v2996_v56, 0.0 }
 0x25e   :  { %v2145_v58 = vmax.f32 %v2998_v61, 0.0  ;;  %v1978_v45 = vpop.f32.mrb[60].mxu0  ;;  %v4486_v34 = vpop.f32.mrb[108].mxu1 }
 0x25f   :  { %v4488_v11 = vpack.c.bf16 %v2144_v4, %v2142_v2  ;;  %v2999_v8 = vadd.f32 %v1978_v45, %v4437_v35  ;;  %v1980_v1 = vpop.f32.mrb[61].mxu0  ;;  %v4491_v9 = vpop.f32.mrb[109].mxu1 }
 0x260   :  { %v4493_v48 = vpack.c.bf16 %v2145_v58, %v2143_v7  ;;  %v3001_v63 = vadd.f32 %v1980_v1, %v4441_v23  ;;  %v1982_v53 = vpop.f32.mrb[62].mxu0  ;;  %v2125_v0 = vpop.f32.mrb[110].mxu1 }
 0x261   :  { %v3003_v59 = vadd.f32 %v1982_v53, %v4437_v35  ;;  %v3000_v27 = vadd.f32 %v2999_v8, %v4443_v55  ;;  %v1984_v12 = vpop.f32.mrb[63].mxu0  ;;  %v2127_v40 = vpop.f32.mrb[111].mxu1 }
 0x262   :  { %v3005_v13 = vadd.f32 %v1984_v12, %v4441_v23  ;;  %v3002_v24 = vadd.f32 %v3001_v63, %v4446_v20 }
 0x263   :  { %v3004_v3 = vadd.f32 %v3003_v59, %v4449_v6  ;;  %v2146_v15 = vmax.f32 %v3000_v27, 0.0 }
 0x264   :  { %v3006_v46 = vadd.f32 %v3005_v13, %v4452_v29  ;;  %v2147_v57 = vmax.f32 %v3002_v24, 0.0 }
 0x265   :  { %v2148_v60 = vmax.f32 %v3004_v3, 0.0 }
 0x266   :  { %v2149_v18 = vmax.f32 %v3006_v46, 0.0  ;;  %v1988_v38 = vpop.f32.mrb[64].mxu0 }
 0x267   :  { %v4502_v21 = vpack.c.bf16 %v2148_v60, %v2146_v15  ;;  %v3007_v62 = vadd.f32 %v1988_v38, %v4437_v35  ;;  %v1990_v55 = vpop.f32.mrb[65].mxu0 }
 0x268   :  { %v4505_v17 = vpack.c.bf16 %v2149_v18, %v2147_v57  ;;  %v3009_v26 = vadd.f32 %v1990_v55, %v4441_v23  ;;  %v1992_v10 = vpop.f32.mrb[66].mxu0 }
 0x269   :  { %v3011_v20 = vadd.f32 %v1992_v10, %v4437_v35  ;;  %v3008_v6 = vadd.f32 %v3007_v62, %v4455_v28  ;;  %v1994_v29 = vpop.f32.mrb[67].mxu0 }
 0x26a   :  { %v3013_v5 = vadd.f32 %v1994_v29, %v4441_v23  ;;  %v3010_v19 = vadd.f32 %v3009_v26, %v4460_v41 }
 0x26b   :  { %v3012_v51 = vadd.f32 %v3011_v20, %v4465_v25  ;;  %v2150_v49 = vmax.f32 %v3008_v6, 0.0 }
 0x26c   :  { %v3014_v36 = vadd.f32 %v3013_v5, %v4468_v43  ;;  %v2151_v52 = vmax.f32 %v3010_v19, 0.0 }
 0x26d   :  { %v2152_v54 = vmax.f32 %v3012_v51, 0.0 }
 0x26e   :  { %v2153_v44 = vmax.f32 %v3014_v36, 0.0  ;;  %v1998_v14 = vpop.f32.mrb[68].mxu0 }
 0x26f   :  { %v2172_v30 = vpack.c.bf16 %v2152_v54, %v2150_v49  ;;  %v3015_v16 = vadd.f32 %v1998_v14, %v4437_v35  ;;  %v2000_v56 = vpop.f32.mrb[69].mxu0 }
 0x270   :  { %v2173_v61 = vpack.c.bf16 %v2153_v44, %v2151_v52  ;;  %v3017_v28 = vadd.f32 %v2000_v56, %v4441_v23  ;;  %v2002_v2 = vpop.f32.mrb[70].mxu0 }
 0x271   :  { %v3019_v4 = vadd.f32 %v2002_v2, %v4437_v35  ;;  %v3016_v41 = vadd.f32 %v3015_v16, %v4471_v37  ;;  %v2004_v25 = vpop.f32.mrb[71].mxu0 }
 0x272   :  { %v3021_v43 = vadd.f32 %v2004_v25, %v4441_v23  ;;  %v3018_v7 = vadd.f32 %v3017_v28, %v4476_v42 }
 0x273   :  { %v3020_v58 = vadd.f32 %v3019_v4, %v4481_v50  ;;  %v2154_v8 = vmax.f32 %v3016_v41, 0.0 }
 0x274   :  { %v3022_v45 = vadd.f32 %v3021_v43, %v2117_v22  ;;  %v2155_v63 = vmax.f32 %v3018_v7, 0.0 }
 0x275   :  { %v2156_v1 = vmax.f32 %v3020_v58, 0.0 }
 0x276   :  { %v2157_v53 = vmax.f32 %v3022_v45, 0.0  ;;  %v2008_v59 = vpop.f32.mrb[72].mxu0 }
 0x277   :  { %v2174_v27 = vpack.c.bf16 %v2156_v1, %v2154_v8  ;;  %v3023_v12 = vadd.f32 %v2008_v59, %v4437_v35  ;;  %v2010_v13 = vpop.f32.mrb[73].mxu0 }
 0x278   :  { %v2175_v24 = vpack.c.bf16 %v2157_v53, %v2155_v63  ;;  %v3025_v37 = vadd.f32 %v2010_v13, %v4441_v23  ;;  %v2012_v3 = vpop.f32.mrb[74].mxu0 }
 0x279   :  { %v3027_v46 = vadd.f32 %v2012_v3, %v4437_v35  ;;  %v3024_v42 = vadd.f32 %v3023_v12, %v4486_v34  ;;  %v2014_v15 = vpop.f32.mrb[75].mxu0 }
 0x27a   :  { %v3029_v50 = vadd.f32 %v2014_v15, %v4441_v23  ;;  %v3026_v22 = vadd.f32 %v3025_v37, %v4491_v9 }
 0x27b   :  { %v3028_v60 = vadd.f32 %v3027_v46, %v2125_v0  ;;  %v2158_v18 = vmax.f32 %v3024_v42, 0.0 }
 0x27c   :  { %v3030_v57 = vadd.f32 %v3029_v50, %v2127_v40  ;;  %v2159_v62 = vmax.f32 %v3026_v22, 0.0 }
 0x27d   :  { %v2160_v38 = vmax.f32 %v3028_v60, 0.0 }
 0x27e   :  { %v2161_v55 = vmax.f32 %v3030_v57, 0.0  ;;  %v2051_v26 = vpop.f32.mrb[44].mxu0 }
 0x27f   :  { %v2176_v10 = vpack.c.bf16 %v2160_v38, %v2158_v18  ;;  %v2971_v20 = vadd.f32 %v2051_v26, %v4437_v35  ;;  %v2053_v6 = vpop.f32.mrb[45].mxu0 }
 0x280   :  { %v2177_v29 = vpack.c.bf16 %v2161_v55, %v2159_v62  ;;  %v2972_v5 = vadd.f32 %v2053_v6, %v4441_v23  ;;  %v2055_v34 = vpop.f32.mrb[46].mxu0 }
 0x281   :  { %v2973_v19 = vadd.f32 %v2055_v34, %v4437_v35  ;;  %v2057_v51 = vpop.f32.mrb[47].mxu0  ;;  %v2130_v0 = vmax.f32 %v2971_v20, 0.0  ;;  %v3357_v35 = vmov 0.0|0.0  }
 0x282   :  { %v2974_v9 = vadd.f32 %v2057_v51, %v4441_v23  ;;  %v2131_v36 = vmax.f32 %v2972_v5, 0.0  ;;  %2903 = vmatprep.subr.bf16.mxu1 %v3357_v35  ;;  %v3359_v23 = vmov 0.0  }
 0x283   :  { %v2132_v40 = vmax.f32 %v2973_v19, 0.0 }
 0x284   :  { %v2133_v49 = vmax.f32 %v2974_v9, 0.0 }
 0x285   :  { %v2162_v54 = vpack.c.bf16 %v2132_v40, %v2130_v0 }
 0x286   :  { %v2163_v52 = vpack.c.bf16 %v2133_v49, %v2131_v36 }
 0x288   :  { %2345 = vmatprep.mubr.bf16.mxu1 %v2163_v52 }
 0x289   :  { %2346 = vmatmul.mubr.bf16.vlgmr.msra.gmra.mrb[112].mxu1 %v2162_v54 }
 0x28a   :  { %2353 = vmatprep.mubr.bf16.mxu1 %v4462_v39 }
 0x291   :  { %2354 = vmatmul.mubr.bf16.gmra.mrb[116].mxu1 %v4457_v33  ;;  %v14_v33 = vstv %s4607_s8 }
 0x292   :  { %2361 = vmatprep.mubr.bf16.mxu1 %v4478_v47  ;;  %15 = vst [vmem:[#allocation2] sm:$0x1] %v14_v33  ;;  %v4546_v47 = vld [vmem:[%s4608_s6] ss:$0 sm:$0xff] }
 0x299   :  { %2362 = vmatmul.mubr.bf16.gmra.mrb[120].mxu1 %v4473_v31  ;;  %v2427_v39 = vld [vmem:[#allocation2] sm:$0x1] }
 0x29a   :  { %2369 = vmatprep.mubr.bf16.mxu1 %v4493_v48  ;;  %2430 = vperm.xlu0 %3103, %v2427_v39  }
 0x2a1   :  { %2370 = vmatmul.mubr.bf16.gmra.mrb[124].mxu1 %v4488_v11 }
 0x2a2   :  { %2377 = vmatprep.mubr.bf16.mxu1 %v4505_v17 }
 0x2a9   :  { %2378 = vmatmul.mubr.bf16.gmra.mrb[128].mxu1 %v4502_v21 }
 0x2aa   :  { %2385 = vmatprep.mubr.bf16.mxu1 %v2173_v61 }
 0x2b1   :  { %2386 = vmatmul.mubr.bf16.gmra.mrb[132].mxu1 %v2172_v30 }
 0x2b2   :  { %2393 = vmatprep.mubr.bf16.mxu1 %v2175_v24 }
 0x2b9   :  { %2394 = vmatmul.mubr.bf16.gmra.mrb[136].mxu1 %v2174_v27 }
 0x2ba   :  { %2401 = vmatprep.mubr.bf16.mxu1 %v2177_v29 }
 0x2c1   :  { %2402 = vmatmul.mubr.bf16.gmra.mrb[140].mxu1 %v2176_v10 }
 0x2c2   :  { %2900 = vmatprep.mubr.msk.f32.mxu1 %vm3358_vm1, %v3359_v23 }
 0x35c   :  { %v2803_v31 = vpop.f32.mrb[112].mxu1 }
 0x35d   :  { %v2804_v11 = vpop.f32.mrb[113].mxu1 }
 0x35e   :  { %v2805_v48 = vadd.f32 %v2804_v11, %v2803_v31  ;;  %v2806_v21 = vpop.f32.mrb[114].mxu1 }
 0x35f   :  { %v2807_v17 = vpop.f32.mrb[115].mxu1 }
 0x360   :  { %v2348_v44 = vadd.f32 %v2805_v48, %v4546_v47  ;;  %v2808_v14 = vadd.f32 %v2807_v17, %v2806_v21 }
 0x362   :  { %v2351_v30 = vadd.f32 %v2808_v14, %v4546_v47  ;;  %v2410_v16 = vmax.f32 %v2348_v44, 0.0 }
 0x364   :  { %v2411_v56 = vmax.f32 %v2351_v30, 0.0  ;;  %v2809_v61 = vpop.f32.mrb[116].mxu1 }
 0x365   :  { %v2810_v28 = vpop.f32.mrb[117].mxu1 }
 0x366   :  { %v2904_v4 = vpack.c.bf16 %v2411_v56, %v2410_v16  ;;  %v2811_v41 = vadd.f32 %v2810_v28, %v2809_v61  ;;  %v2812_v25 = vpop.f32.mrb[118].mxu1 }
 0x367   :  { %v2813_v43 = vpop.f32.mrb[119].mxu1 }
 0x368   :  { %v2356_v7 = vadd.f32 %v2811_v41, %v4546_v47  ;;  %v2814_v58 = vadd.f32 %v2813_v43, %v2812_v25  ;;  %2906 = vmatpush3.bf16.xpose.msk.msra.mxu1 %vm4552_vm3, %v2904_v4 }
 0x369   :  { %2907 = vmatprep.subr.bf16.mxu1 %v3357_v35 }
 0x36a   :  { %v2359_v45 = vadd.f32 %v2814_v58, %v4546_v47  ;;  %v2412_v8 = vmax.f32 %v2356_v7, 0.0 }
 0x36c   :  { %v2413_v1 = vmax.f32 %v2359_v45, 0.0  ;;  %v2815_v63 = vpop.f32.mrb[120].mxu1 }
 0x36d   :  { %v2816_v53 = vpop.f32.mrb[121].mxu1 }
 0x36e   :  { %v2908_v59 = vpack.c.bf16 %v2413_v1, %v2412_v8  ;;  %v2817_v27 = vadd.f32 %v2816_v53, %v2815_v63  ;;  %v2818_v12 = vpop.f32.mrb[122].mxu1 }
 0x36f   :  { %v2819_v13 = vpop.f32.mrb[123].mxu1 }
 0x370   :  { %v2364_v24 = vadd.f32 %v2817_v27, %v4546_v47  ;;  %v2820_v37 = vadd.f32 %v2819_v13, %v2818_v12  ;;  %2910 = vmatpush3.bf16.xpose.msk.msra.mxu1 %vm4552_vm3, %v2908_v59 }
 0x371   :  { %2911 = vmatprep.subr.bf16.mxu1 %v3357_v35 }
 0x372   :  { %v2367_v3 = vadd.f32 %v2820_v37, %v4546_v47  ;;  %v2414_v46 = vmax.f32 %v2364_v24, 0.0  ;;  %v2426_v37 = vld [vmem:[%s4609_s7] sm:$0x1] }
 0x374   :  { %v2415_v42 = vmax.f32 %v2367_v3, 0.0  ;;  %v2821_v15 = vpop.f32.mrb[124].mxu1  ;;  %v2431_v3 = vpop.permute.xlu0 %2430 }
 0x375   :  { %v2822_v50 = vpop.f32.mrb[125].mxu1 }
 0x376   :  { %v2912_v22 = vpack.c.bf16 %v2415_v42, %v2414_v46  ;;  %v2823_v60 = vadd.f32 %v2822_v50, %v2821_v15  ;;  %v2824_v57 = vpop.f32.mrb[126].mxu1  ;;  %v2436_v46 = vrot.slane %v2431_v3, %v3761_v32 }
 0x377   :  { %v2825_v18 = vpop.f32.mrb[127].mxu1 }
 0x378   :  { %v2372_v38 = vadd.f32 %v2823_v60, %v4546_v47  ;;  %v2826_v62 = vadd.f32 %v2825_v18, %v2824_v57  ;;  %2914 = vmatpush3.bf16.xpose.msk.msra.mxu1 %vm4552_vm3, %v2912_v22 }
 0x379   :  { %2915 = vmatprep.subr.bf16.mxu1 %v3357_v35 }
 0x37a   :  { %v2375_v55 = vadd.f32 %v2826_v62, %v4546_v47  ;;  %v2416_v26 = vmax.f32 %v2372_v38, 0.0 }
 0x37c   :  { %v2417_v10 = vmax.f32 %v2375_v55, 0.0  ;;  %v2827_v20 = vpop.f32.mrb[128].mxu1 }
 0x37d   :  { %v2828_v6 = vpop.f32.mrb[129].mxu1 }
 0x37e   :  { %v2916_v29 = vpack.c.bf16 %v2417_v10, %v2416_v26  ;;  %v2829_v5 = vadd.f32 %v2828_v6, %v2827_v20  ;;  %v2830_v34 = vpop.f32.mrb[130].mxu1 }
 0x37f   :  { %v2831_v19 = vpop.f32.mrb[131].mxu1 }
 0x380   :  { %v2380_v51 = vadd.f32 %v2829_v5, %v4546_v47  ;;  %v2832_v9 = vadd.f32 %v2831_v19, %v2830_v34  ;;  %2918 = vmatpush3.bf16.xpose.msk.msra.mxu1 %vm4552_vm3, %v2916_v29 }
 0x381   :  { %2919 = vmatprep.subr.bf16.mxu1 %v3357_v35 }
 0x382   :  { %v2383_v0 = vadd.f32 %v2832_v9, %v4546_v47  ;;  %v2418_v40 = vmax.f32 %v2380_v51, 0.0 }
 0x384   :  { %v2419_v36 = vmax.f32 %v2383_v0, 0.0  ;;  %v2833_v49 = vpop.f32.mrb[132].mxu1 }
 0x385   :  { %v2834_v54 = vpop.f32.mrb[133].mxu1 }
 0x386   :  { %v2920_v52 = vpack.c.bf16 %v2419_v36, %v2418_v40  ;;  %v2835_v23 = vadd.f32 %v2834_v54, %v2833_v49  ;;  %v2836_v33 = vpop.f32.mrb[134].mxu1 }
 0x387   :  { %v2837_v39 = vpop.f32.mrb[135].mxu1 }
 0x388   :  { %v2388_v31 = vadd.f32 %v2835_v23, %v4546_v47  ;;  %v2838_v11 = vadd.f32 %v2837_v39, %v2836_v33  ;;  %2922 = vmatpush3.bf16.xpose.msk.msra.mxu1 %vm4552_vm3, %v2920_v52 }
 0x389   :  { %2923 = vmatprep.subr.bf16.mxu1 %v3357_v35 }
 0x38a   :  { %v2391_v48 = vadd.f32 %v2838_v11, %v4546_v47  ;;  %v2420_v21 = vmax.f32 %v2388_v31, 0.0 }
 0x38c   :  { %v2421_v17 = vmax.f32 %v2391_v48, 0.0  ;;  %v2839_v44 = vpop.f32.mrb[136].mxu1 }
 0x38d   :  { %v2840_v14 = vpop.f32.mrb[137].mxu1 }
 0x38e   :  { %v2924_v30 = vpack.c.bf16 %v2421_v17, %v2420_v21  ;;  %v2841_v16 = vadd.f32 %v2840_v14, %v2839_v44  ;;  %v2842_v56 = vpop.f32.mrb[138].mxu1 }
 0x38f   :  { %v2843_v61 = vpop.f32.mrb[139].mxu1 }
 0x390   :  { %v2396_v28 = vadd.f32 %v2841_v16, %v4546_v47  ;;  %v2844_v4 = vadd.f32 %v2843_v61, %v2842_v56  ;;  %2926 = vmatpush3.bf16.xpose.msk.msra.mxu1 %vm4552_vm3, %v2924_v30 }
 0x391   :  { %2927 = vmatprep.subr.bf16.mxu1 %v3357_v35 }
 0x392   :  { %v2399_v41 = vadd.f32 %v2844_v4, %v4546_v47  ;;  %v2422_v25 = vmax.f32 %v2396_v28, 0.0 }
 0x394   :  { %v2423_v43 = vmax.f32 %v2399_v41, 0.0  ;;  %v2845_v7 = vpop.f32.mrb[140].mxu1 }
 0x395   :  { %v2846_v58 = vpop.f32.mrb[141].mxu1 }
 0x396   :  { %v2928_v45 = vpack.c.bf16 %v2423_v43, %v2422_v25  ;;  %v2847_v8 = vadd.f32 %v2846_v58, %v2845_v7  ;;  %v2848_v1 = vpop.f32.mrb[142].mxu1 }
 0x397   :  { %v2849_v63 = vpop.f32.mrb[143].mxu1 }
 0x398   :  { %v2404_v53 = vadd.f32 %v2847_v8, %v4546_v47  ;;  %v2850_v59 = vadd.f32 %v2849_v63, %v2848_v1  ;;  %2930 = vmatpush3.bf16.xpose.msk.msra.mxu1 %vm4552_vm3, %v2928_v45 }
 0x399   :  { %2931 = vmatprep.subr.bf16.mxu1 %v3357_v35 }
 0x39a   :  { %v2407_v27 = vadd.f32 %v2850_v59, %v4546_v47  ;;  %v2424_v12 = vmax.f32 %v2404_v53, 0.0 }
 0x39c   :  { %v2425_v13 = vmax.f32 %v2407_v27, 0.0 }
 0x39e   :  { %v2932_v24 = vpack.c.bf16 %v2425_v13, %v2424_v12 }
 0x3a0   :  { %2934 = vmatpush3.bf16.xpose.msk.msra.mxu1 %vm4552_vm3, %v2932_v24 }
 0x3a7   :  { %2901 = vmatmul.mubr.msk.f32.vlgmr.msra.gmra.mrb[144].mxu1 %vm2437_vm2, %v2426_v37 }
 0x47a   :  { %v2555_v42 = vpop.f32.mrb[144].mxu1 }
 0x47b   :  { %v2556_v15 = vadd.f32 %v2555_v42, %v2436_v46  ;;  %v2902_v35 = vpop.f32.mrb[145].mxu1 }
 0x47d   :  { %v2559_v50 = vsub.f32 0.0, %v2556_v15 }
 0x47f   :  { %v2560_v47 = vmul.f32 1.442695, %v2559_v50 }
 0x481   :  { %3320 = vpow2.f32 %v2560_v47 }
 0x48b   :  { %v3321_v22 = vpop.eup %3320 }
 0x48c   :  { %v2562_v60 = vadd.f32 1.0, %v3321_v22 }
 0x48e   :  { %3322 = vrcp.f32 %v2562_v60 }
 0x498   :  { %v3323_v2 = vpop.eup %3322 }
 0x499   :  { %2564 = vst [vmem:[%s4610_s9] sm:$0x1] %v3323_v2 }

</bundles_post_ra>
